<compile_context>
chip_gen: v7x
topology: tpu7x:2x2x1
jax: 0.10.0
libtpu: 0.0.40
codegen_flags: <defaults>
</compile_context>

<pallas_src>
import numpy as np
import jax
import jax.numpy as jnp
from jax.experimental import pallas as pl
from jax.experimental.pallas import tpu as pltpu


def _round_up(x, m):
    return (x + m - 1) // m * m


def aux_head_kernel(x_ref, wpc_ref, b1_ref, w2_ref, b2_ref, wfc_ref, bfc_ref,
                    out_ref):
    # ReLU on the lane-dense slab (f32 on the VPU).
    x = jnp.maximum(x_ref[...], 0.0)                               # (TB, HWC)

    # Fused AvgPool + 1x1 conv + BN1 scale: one bf16 MXU matmul, K = H*W*C,
    # N = 4*128 (4 pooled windows, tap-major lanes).
    h1 = jnp.dot(x.astype(jnp.bfloat16), wpc_ref[...],
                 preferred_element_type=jnp.float32)               # (TB, 512)
    h1 = jnp.maximum(h1 + b1_ref[...], 0.0)

    # 2x2 conv on the 2x2 map + BN2 scale: one bf16 matmul, K = 512.
    h2 = jnp.dot(h1.astype(jnp.bfloat16), w2_ref[...],
                 preferred_element_type=jnp.float32)               # (TB, 768)
    h2 = jnp.maximum(h2 + b2_ref[...], 0.0)

    # Classifier; class dim pre-padded to 128 lanes -> unmasked stores.
    out_ref[...] = (jnp.dot(h2.astype(jnp.bfloat16), wfc_ref[...],
                            preferred_element_type=jnp.float32)
                    + bfc_ref[...])


def aux_head_forward(x_nchw, kparams, num_classes, *, tile_b=512):
    """x_nchw: (N, C, 8, 8) float32. Returns (N, num_classes) float32."""
    (wpc, b1t, w2f, b2, wfc_p, bfc_p) = kparams
    N, C, H, W = x_nchw.shape
    in_feat = H * W * C
    out_pad = wfc_p.shape[1]

    # Lane-dense slab: (N, H*W*C), channel-minor, matching the fused weight.
    x = jnp.transpose(x_nchw, (0, 2, 3, 1)).reshape(N, in_feat)

    # --- batch tile selection (VMEM-budget driven) ------------------------
    n8 = _round_up(N, 8)
    w_bytes = ((wpc.size + w2f.size + wfc_p.size) * 2        # bf16 weights
               + (b1t.size + b2.size + bfc_p.size) * 4)      # f32 biases
    # Per-sample VMEM: double-buffered x/out tiles + f32/bf16 intermediates.
    per_sample = 2 * 4 * (in_feat + out_pad) + 6 * (in_feat + 512 + 768 + out_pad)
    budget = 40 << 20                    # conservative across v5e/v6e/v7x
    avail = max(budget - 2 * w_bytes - (8 << 20), 1 << 20)
    tb_cap = max(8, (avail // per_sample) // 8 * 8)
    tb = max(8, min(_round_up(tile_b, 8), n8, tb_cap))
    if n8 >= 16 and n8 // tb < 2:        # >= 2 grid steps for v7x's 2 TCs
        tb = min(tb, ((n8 // 2 + 7) // 8) * 8)
    n_pad = _round_up(N, tb)
    if n_pad != N:
        x = jnp.pad(x, ((0, n_pad - N), (0, 0)))
    grid = (n_pad // tb,)

    tile_bytes = 4 * tb * (in_feat + out_pad)
    scratch_bytes = 6 * tb * (in_feat + 512 + 768 + out_pad)
    vmem_limit = int(min(max(2 * tile_bytes + 2 * w_bytes + scratch_bytes
                             + (8 << 20), 32 << 20), 48 << 20))

    flops = 2 * n_pad * (in_feat * 512 + 512 * 768 + 768 * out_pad)
    bytes_accessed = 4 * n_pad * (in_feat + out_pad) + w_bytes

    out = pl.pallas_call(
        aux_head_kernel,
        out_shape=jax.ShapeDtypeStruct((n_pad, out_pad), jnp.float32),
        grid=grid,
        in_specs=[
            pl.BlockSpec((tb, in_feat), lambda b: (b, 0)),
            pl.BlockSpec(wpc.shape, lambda b: (0, 0)),    # resident weights
            pl.BlockSpec(b1t.shape, lambda b: (0, 0)),
            pl.BlockSpec(w2f.shape, lambda b: (0, 0)),
            pl.BlockSpec(b2.shape, lambda b: (0, 0)),
            pl.BlockSpec(wfc_p.shape, lambda b: (0, 0)),
            pl.BlockSpec(bfc_p.shape, lambda b: (0, 0)),
        ],
        out_specs=pl.BlockSpec((tb, out_pad), lambda b: (b, 0)),
        compiler_params=pltpu.CompilerParams(
            dimension_semantics=("parallel",),
            vmem_limit_bytes=vmem_limit),
        cost_estimate=pl.CostEstimate(flops=int(flops), transcendentals=0,
                                      bytes_accessed=int(bytes_accessed)),
    )(x, wpc, b1t, w2f, b2, wfc_p, bfc_p)

    return out[:N, :num_classes]


def make_params(key, C, num_classes):
    """Eval-mode (folded) BN params, matching the PyTorch module layout."""
    ks = jax.random.split(key, 12)
    eps = 1e-5
    # Conv1: PyTorch weight (128, C, 1, 1) -> (C, 128)
    W1 = jax.random.normal(ks[0], (128, C, 1, 1), jnp.float32) * 0.1
    w1 = jnp.transpose(W1.reshape(128, C), (1, 0))
    # BN1 (eval mode, folded to scale/bias)
    g1 = 1.0 + 0.1 * jax.random.normal(ks[1], (128,), jnp.float32)
    be1 = 0.1 * jax.random.normal(ks[2], (128,), jnp.float32)
    m1 = 0.1 * jax.random.normal(ks[3], (128,), jnp.float32)
    v1 = jnp.abs(jax.random.normal(ks[4], (128,), jnp.float32)) + 0.5
    s1 = (g1 / jnp.sqrt(v1 + eps)).reshape(1, 128)
    b1 = (be1 - m1 * g1 / jnp.sqrt(v1 + eps)).reshape(1, 128)
    # Conv2: PyTorch weight (768, 128, 2, 2) -> (4, 128, 768), tap k = kh*2+kw
    W2 = jax.random.normal(ks[5], (768, 128, 2, 2), jnp.float32) * 0.05
    w2 = jnp.transpose(W2.reshape(768, 128, 4), (2, 1, 0))
    # BN2 (eval mode, folded)
    g2 = 1.0 + 0.1 * jax.random.normal(ks[6], (768,), jnp.float32)
    be2 = 0.1 * jax.random.normal(ks[7], (768,), jnp.float32)
    m2 = 0.1 * jax.random.normal(ks[8], (768,), jnp.float32)
    v2 = jnp.abs(jax.random.normal(ks[9], (768,), jnp.float32)) + 0.5
    s2 = (g2 / jnp.sqrt(v2 + eps)).reshape(1, 768)
    b2 = (be2 - m2 * g2 / jnp.sqrt(v2 + eps)).reshape(1, 768)
    # Linear: PyTorch weight (num_classes, 768) -> (768, num_classes)
    Wfc = jax.random.normal(ks[10], (num_classes, 768), jnp.float32) * 0.05
    wfc = jnp.transpose(Wfc, (1, 0))
    bfc = (0.1 * jax.random.normal(ks[11], (num_classes,), jnp.float32)
           ).reshape(1, num_classes)
    return (w1, s1, b1, w2, s2, b2, wfc, bfc)


def prepare_kernel_params(params, H=8, W=8):
    """Host-side weight prep:
      * fold the 1/25 AvgPool factor, BN1 scale and the 1x1 conv into ONE
        lane-dense (H*W*C, 4*128) matrix (window-major / channel-minor lanes,
        k = ph*2 + pw to match the tap-major 2x2-conv rows),
      * flatten the 2x2-conv taps to a K=512 matrix with BN2 scale folded,
      * pad the classifier output dim to 128 lanes,
      * cast all matmul weights to bf16 (biases stay f32)."""
    (w1, s1, b1, w2, s2, b2, wfc, bfc) = params
    C = w1.shape[0]
    # AvgPool2d(5, stride=3) on 8x8 -> windows start at rows/cols {0, 3}.
    pool = np.zeros((H * W, 4), np.float32)
    for ph in range(2):
        for pw in range(2):
            k = ph * 2 + pw
            for h in range(3 * ph, 3 * ph + 5):
                for w in range(3 * pw, 3 * pw + 5):
                    pool[h * W + w, k] = 1.0 / 25.0
    pool = jnp.asarray(pool)
    w1s = w1 * s1                                            # (C,128)
    # (H*W, C, 4, 128) -> (H*W*C, 512); row = (h*W+w)*C + c, col = k*128 + o
    wpc = jnp.einsum('pk,co->pcko', pool, w1s).reshape(H * W * C, 4 * 128)
    b1t = jnp.tile(b1, (1, 4))                               # (1, 512)
    w2f = (w2 * s2.reshape(1, 1, 768)).reshape(512, 768)     # tap-major K=512
    num_classes = wfc.shape[1]
    out_pad = _round_up(max(num_classes, 128), 128)
    wfc_p = jnp.zeros((wfc.shape[0], out_pad), jnp.float32)
    wfc_p = wfc_p.at[:, :num_classes].set(wfc)
    bfc_p = jnp.zeros((1, out_pad), jnp.float32)
    bfc_p = bfc_p.at[:, :num_classes].set(bfc)
    return (wpc.astype(jnp.bfloat16), b1t, w2f.astype(jnp.bfloat16), b2,
            wfc_p.astype(jnp.bfloat16), bfc_p)


def reference_forward(x_nchw, params):
    """Plain-JAX f32 reference mirroring PyTorch (eval-mode BN), un-fused."""
    (w1, s1, b1, w2, s2, b2, wfc, bfc) = params
    x = jnp.maximum(x_nchw, 0.0)                      # (N,C,8,8)
    x = jnp.transpose(x, (0, 2, 3, 1))                # NHWC
    acc2 = 0.0
    for ph in range(2):
        for pw in range(2):
            p = jnp.mean(x[:, 3*ph:3*ph+5, 3*pw:3*pw+5, :], axis=(1, 2))
            h1 = jnp.maximum(p @ w1 * s1 + b1, 0.0)
            acc2 = acc2 + h1 @ w2[ph * 2 + pw]
    h2 = jnp.maximum(acc2 * s2 + b2, 0.0)
    return h2 @ wfc + bfc


if __name__ == "__main__":
    N, C, H, W = 2, 4, 8, 8          # "assuming input size 8x8"
    num_classes = 10

    key = jax.random.PRNGKey(0)
    kx, kp = jax.random.split(key)
    x = jax.random.normal(kx, (N, C, H, W), jnp.float32)
    params = make_params(kp, C, num_classes)
    kparams = prepare_kernel_params(params, H=H, W=W)

    out = aux_head_forward(x, kparams, num_classes)
    out = jax.block_until_ready(out)

    ref = reference_forward(x, params)
    assert out.shape == (N, num_classes)
    max_err = float(jnp.max(jnp.abs(out - ref)))
    # bf16 matmul operands with f32 accumulation -> relaxed tolerance.
    assert jnp.allclose(out, ref, atol=2e-2, rtol=2e-2), max_err

    print("KERNEL_OK")
</pallas_src>

<mosaic_0001>
module attributes {stable_mosaic.version = 11 : i64} {
  func.func @aux_head_kernel(%arg0: i32, %arg1: memref<8x256xf32, #tpu.memory_space<vmem>>, %arg2: memref<256x512xbf16, #tpu.memory_space<vmem>>, %arg3: memref<1x512xf32, #tpu.memory_space<vmem>>, %arg4: memref<512x768xbf16, #tpu.memory_space<vmem>>, %arg5: memref<1x768xf32, #tpu.memory_space<vmem>>, %arg6: memref<768x128xbf16, #tpu.memory_space<vmem>>, %arg7: memref<1x128xf32, #tpu.memory_space<vmem>>, %arg8: memref<8x128xf32, #tpu.memory_space<vmem>>) attributes {dimension_semantics = [#tpu.dimension_semantics<parallel>], iteration_bounds = array<i64: 1>, scalar_prefetch = 0 : i64, scratch_operands = 0 : i64, tpu.core_type = #tpu.core_type<tc>, window_params = [{transform_indices = @transform_0, window_bounds = array<i64: 8, 256>}, {pipeline_mode = #tpu.pipeline_mode<synchronous>, transform_indices = @transform_1, window_bounds = array<i64: 256, 512>}, {pipeline_mode = #tpu.pipeline_mode<synchronous>, transform_indices = @transform_2, window_bounds = array<i64: 1, 512>}, {pipeline_mode = #tpu.pipeline_mode<synchronous>, transform_indices = @transform_3, window_bounds = array<i64: 512, 768>}, {pipeline_mode = #tpu.pipeline_mode<synchronous>, transform_indices = @transform_4, window_bounds = array<i64: 1, 768>}, {pipeline_mode = #tpu.pipeline_mode<synchronous>, transform_indices = @transform_5, window_bounds = array<i64: 768, 128>}, {pipeline_mode = #tpu.pipeline_mode<synchronous>, transform_indices = @transform_6, window_bounds = array<i64: 1, 128>}, {transform_indices = @transform_7, window_bounds = array<i64: 8, 128>}]} {
    %c0 = arith.constant 0 : index
    %c0_0 = arith.constant 0 : index
    %0 = vector.load %arg1[%c0, %c0_0] : memref<8x256xf32, #tpu.memory_space<vmem>>, vector<8x256xf32>
    %cst = arith.constant 0.000000e+00 : f32
    %1 = vector.broadcast %cst : f32 to vector<8x256xf32>
    %2 = arith.maximumf %0, %1 : vector<8x256xf32>
    %3 = arith.truncf %2 : vector<8x256xf32> to vector<8x256xbf16>
    %c0_1 = arith.constant 0 : index
    %c0_2 = arith.constant 0 : index
    %4 = vector.load %arg2[%c0_1, %c0_2] : memref<256x512xbf16, #tpu.memory_space<vmem>>, vector<256x512xbf16>
    %cst_3 = arith.constant dense<0.000000e+00> : vector<8x512xf32>
    %5 = tpu.matmul %3, %4, %cst_3 {dimension_numbers = #tpu.dot_dimension_numbers<[1], [0], [0], [1], [0, 0, 1, 1], [], []>} : vector<8x256xbf16>, vector<256x512xbf16>, vector<8x512xf32> -> vector<8x512xf32>
    %c0_4 = arith.constant 0 : index
    %c0_5 = arith.constant 0 : index
    %6 = vector.load %arg3[%c0_4, %c0_5] : memref<1x512xf32, #tpu.memory_space<vmem>>, vector<1x512xf32>
    %7 = vector.broadcast %6 : vector<1x512xf32> to vector<8x512xf32>
    %8 = arith.addf %5, %7 : vector<8x512xf32>
    %cst_6 = arith.constant 0.000000e+00 : f32
    %9 = vector.broadcast %cst_6 : f32 to vector<8x512xf32>
    %10 = arith.maximumf %8, %9 : vector<8x512xf32>
    %11 = arith.truncf %10 : vector<8x512xf32> to vector<8x512xbf16>
    %c0_7 = arith.constant 0 : index
    %c0_8 = arith.constant 0 : index
    %12 = vector.load %arg4[%c0_7, %c0_8] : memref<512x768xbf16, #tpu.memory_space<vmem>>, vector<512x768xbf16>
    %cst_9 = arith.constant dense<0.000000e+00> : vector<8x768xf32>
    %13 = tpu.matmul %11, %12, %cst_9 {dimension_numbers = #tpu.dot_dimension_numbers<[1], [0], [0], [1], [0, 0, 1, 1], [], []>} : vector<8x512xbf16>, vector<512x768xbf16>, vector<8x768xf32> -> vector<8x768xf32>
    %c0_10 = arith.constant 0 : index
    %c0_11 = arith.constant 0 : index
    %14 = vector.load %arg5[%c0_10, %c0_11] : memref<1x768xf32, #tpu.memory_space<vmem>>, vector<1x768xf32>
    %15 = vector.broadcast %14 : vector<1x768xf32> to vector<8x768xf32>
    %16 = arith.addf %13, %15 : vector<8x768xf32>
    %cst_12 = arith.constant 0.000000e+00 : f32
    %17 = vector.broadcast %cst_12 : f32 to vector<8x768xf32>
    %18 = arith.maximumf %16, %17 : vector<8x768xf32>
    %19 = arith.truncf %18 : vector<8x768xf32> to vector<8x768xbf16>
    %c0_13 = arith.constant 0 : index
    %c0_14 = arith.constant 0 : index
    %20 = vector.load %arg6[%c0_13, %c0_14] : memref<768x128xbf16, #tpu.memory_space<vmem>>, vector<768x128xbf16>
    %cst_15 = arith.constant dense<0.000000e+00> : vector<8x128xf32>
    %21 = tpu.matmul %19, %20, %cst_15 {dimension_numbers = #tpu.dot_dimension_numbers<[1], [0], [0], [1], [0, 0, 1, 1], [], []>} : vector<8x768xbf16>, vector<768x128xbf16>, vector<8x128xf32> -> vector<8x128xf32>
    %c0_16 = arith.constant 0 : index
    %c0_17 = arith.constant 0 : index
    %22 = vector.load %arg7[%c0_16, %c0_17] : memref<1x128xf32, #tpu.memory_space<vmem>>, vector<1x128xf32>
    %23 = vector.broadcast %22 : vector<1x128xf32> to vector<8x128xf32>
    %24 = arith.addf %21, %23 : vector<8x128xf32>
    %c0_18 = arith.constant 0 : index
    %c0_19 = arith.constant 0 : index
    %25 = vector.load %arg8[%c0_18, %c0_19] : memref<8x128xf32, #tpu.memory_space<vmem>>, vector<8x128xf32>
    tpu.vector_store %arg8[%c0_18, %c0_19], %24 {strides = array<i32>} : memref<8x128xf32, #tpu.memory_space<vmem>>, vector<8x128xf32>,
    return
  }
  func.func @transform_0(%arg0: i32) -> (i32, i32) {
    %c0_i32 = arith.constant 0 : i32
    %c0_i32_0 = arith.constant 0 : i32
    return %arg0, %c0_i32 : i32, i32
  }
  func.func @transform_1(%arg0: i32) -> (i32, i32) {
    %c0_i32 = arith.constant 0 : i32
    %c0_i32_0 = arith.constant 0 : i32
    %c0_i32_1 = arith.constant 0 : i32
    return %c0_i32, %c0_i32_0 : i32, i32
  }
  func.func @transform_2(%arg0: i32) -> (i32, i32) {
    %c0_i32 = arith.constant 0 : i32
    %c0_i32_0 = arith.constant 0 : i32
    %c0_i32_1 = arith.constant 0 : i32
    return %c0_i32, %c0_i32_0 : i32, i32
  }
  func.func @transform_3(%arg0: i32) -> (i32, i32) {
    %c0_i32 = arith.constant 0 : i32
    %c0_i32_0 = arith.constant 0 : i32
    %c0_i32_1 = arith.constant 0 : i32
    return %c0_i32, %c0_i32_0 : i32, i32
  }
  func.func @transform_4(%arg0: i32) -> (i32, i32) {
    %c0_i32 = arith.constant 0 : i32
    %c0_i32_0 = arith.constant 0 : i32
    %c0_i32_1 = arith.constant 0 : i32
    return %c0_i32, %c0_i32_0 : i32, i32
  }
  func.func @transform_5(%arg0: i32) -> (i32, i32) {
    %c0_i32 = arith.constant 0 : i32
    %c0_i32_0 = arith.constant 0 : i32
    %c0_i32_1 = arith.constant 0 : i32
    return %c0_i32, %c0_i32_0 : i32, i32
  }
  func.func @transform_6(%arg0: i32) -> (i32, i32) {
    %c0_i32 = arith.constant 0 : i32
    %c0_i32_0 = arith.constant 0 : i32
    %c0_i32_1 = arith.constant 0 : i32
    return %c0_i32, %c0_i32_0 : i32, i32
  }
  func.func @transform_7(%arg0: i32) -> (i32, i32) {
    %c0_i32 = arith.constant 0 : i32
    %c0_i32_0 = arith.constant 0 : i32
    return %arg0, %c0_i32 : i32, i32
  }
}

</mosaic_0001>

<bundles_post_ra>
// kernel: tpu_custom_call.1
= control target key start
LH: loop header
LB: loop body
LE: loop exit
PB: predicated region body
PF: predicated region fallthrough
CT: control target
= control target key end

     0   :  { %12 = vsyncpa [#allocation3], 0  ;;  %s3685_s0 = inlined_call_operand.hbm [shape: f32[8,256], index: 0, kind: input, shape index: {}]   ;;  %s3686_s1 = inlined_call_operand.hbm [shape: bf16[256,512], index: 1, kind: input, shape index: {}]   ;;  %s3687_s2 = inlined_call_operand.vmem [shape: f32[1,512], index: 2, kind: input, shape index: {}]   ;;  %s3688_s3 = inlined_call_operand.hbm [shape: bf16[512,768], index: 3, kind: input, shape index: {}]   ;;  %s3689_s4 = inlined_call_operand.vmem [shape: f32[1,768], index: 4, kind: input, shape index: {}]   ;;  %s3690_s5 = inlined_call_operand.hbm [shape: bf16[768,128], index: 5, kind: input, shape index: {}]   ;;  %s3691_s6 = inlined_call_operand.vmem [shape: f32[1,128], index: 6, kind: input, shape index: {}]   ;;  %s3692_s7 = inlined_call_operand.hbm [shape: f32[8,128], index: 7, kind: output, shape index: {}]  }
   0x1   :  { %13 = vsyncpa [#allocation6], 0 }
   0x2   :  { %14 = vsyncpa [#allocation9], 0 }
   0x3   :  { %15 = vsyncpa [#allocation4], 0  ;;  %s3504_s24 = smov [#allocation5]   ;;  %s3386_s28 = scalar_lea.hbm %s3686_s1, 8192 }
   0x4   :  { %s31_s25 = sshll.u32 %s3504_s24, 4  ;;  %p3387_p0 = scmp.ne.s32.totalorder %s3686_s1, %s3386_s28  ;;  %s32_s25 = int_to_ptr.vmem [resolvable:$true] %s31_s25 }
   0x5   :  { %p3390_p1 = scmp.lt.u32.totalorder %s3386_s28, %s3686_s1 }
   0x7   :  { %p3392_p2 = pnand %p3390_p1, %p3387_p0 }
   0x9   :  { %3395 = shalt.err (!%p3392_p2)
}
   0xa   :  { %s3396_s10 = scalar_lea.vmem %s32_s25, 8192  ;;  %p3401_p4 = scmp.lt.s32.totalorder %s32_s25, %s32_s25 }
   0xb   :  { %p3397_p3 = scmp.ne.s32.totalorder %s32_s25, %s3396_s10  ;;  %p3402_p5 = scmp.lt.s32.totalorder %s3396_s10, %s3396_s10 }
   0xd   :  { %p3403_p6 = por %p3402_p5, %p3401_p4 }
   0xf   :  { %p3404_p7 = pnand %p3403_p6, %p3397_p3 }
  0x11   :  { %3407 = shalt.err (!%p3404_p7)
}
  0x12   :  { %s3505_s11 = smov 256   ;;  %s3506_s12 = smov 16  }
  0x13   :  { %37 = dma.hbm_to_vmem [thread:$0]  %s3686_s1, 8192, %s32_s25, [#allocation6], %s3505_s11, %s3505_s11, %s3506_s12  }
  0x14   :  { %s3507_s15 = smov [#allocation2]   ;;  %s3508_s17 = smov [#allocation7]  }
  0x15   :  { %s22_s16 = sshll.u32 %s3507_s15, 4  ;;  %s45_s18 = sshll.u32 %s3508_s17, 4  ;;  %s23_s16 = int_to_ptr.vmem [resolvable:$true] %s22_s16  ;;  %s46_s18 = int_to_ptr.vmem [resolvable:$true] %s45_s18 }
  0x16   :  { %s3408_s21 = scalar_lea.hbm %s3685_s0, 256 }
  0x17   :  { %p3409_p8 = scmp.ne.s32.totalorder %s3685_s0, %s3408_s21  ;;  %p3412_p9 = scmp.lt.u32.totalorder %s3408_s21, %s3685_s0 }
  0x19   :  { %p3414_p10 = pnand %p3412_p9, %p3409_p8 }
  0x1b   :  { %3417 = shalt.err (!%p3414_p10)
}
  0x1c   :  { %s3418_s1 = scalar_lea.vmem %s23_s16, 256  ;;  %p3423_p12 = scmp.lt.s32.totalorder %s23_s16, %s23_s16 }
  0x1d   :  { %p3419_p11 = scmp.ne.s32.totalorder %s23_s16, %s3418_s1  ;;  %p3424_p13 = scmp.lt.s32.totalorder %s3418_s1, %s3418_s1 }
  0x1f   :  { %p3425_p0 = por %p3424_p13, %p3423_p12 }
  0x21   :  { %p3426_p1 = pnand %p3425_p0, %p3419_p11 }
  0x23   :  { %3429 = shalt.err (!%p3426_p1)
}
  0x24   :  { %25 = dma.hbm_to_vmem [thread:$0]  %s3685_s0, 256, %s23_s16, [#allocation3]  }
  0x25   :  { %s3430_s30 = scalar_lea.hbm %s3688_s3, 24576 }
  0x26   :  { %p3431_p2 = scmp.ne.s32.totalorder %s3688_s3, %s3430_s30  ;;  %p3434_p3 = scmp.lt.u32.totalorder %s3430_s30, %s3688_s3 }
  0x28   :  { %p3436_p4 = pnand %p3434_p3, %p3431_p2 }
  0x2a   :  { %3439 = shalt.err (!%p3436_p4)
}
  0x2b   :  { %s3440_s12 = scalar_lea.vmem %s46_s18, 24576  ;;  %p3445_p6 = scmp.lt.s32.totalorder %s46_s18, %s46_s18 }
  0x2c   :  { %p3441_p5 = scmp.ne.s32.totalorder %s46_s18, %s3440_s12  ;;  %p3446_p7 = scmp.lt.s32.totalorder %s3440_s12, %s3440_s12 }
  0x2e   :  { %p3447_p8 = por %p3446_p7, %p3445_p6 }
  0x30   :  { %p3448_p9 = pnand %p3447_p8, %p3441_p5 }
  0x32   :  { %3451 = shalt.err (!%p3448_p9)
}
  0x33   :  { %s3509_s0 = smov 384   ;;  %s3510_s13 = smov 24  }
  0x34   :  { %51 = dma.hbm_to_vmem [thread:$0]  %s3688_s3, 24576, %s46_s18, [#allocation6], %s3509_s0, %s3509_s0, %s3510_s13  }
  0x35   :  { %s3511_s16 = smov [#allocation8]   ;;  %s3452_s21 = scalar_lea.hbm %s3690_s5, 6144 }
  0x36   :  { %s59_s17 = sshll.u32 %s3511_s16, 4  ;;  %p3453_p10 = scmp.ne.s32.totalorder %s3690_s5, %s3452_s21  ;;  %s60_s17 = int_to_ptr.vmem [resolvable:$true] %s59_s17 }
  0x37   :  { %p3456_p11 = scmp.lt.u32.totalorder %s3452_s21, %s3690_s5 }
  0x39   :  { %p3458_p12 = pnand %p3456_p11, %p3453_p10 }
  0x3b   :  { %3461 = shalt.err (!%p3458_p12)
}
  0x3c   :  { %s3462_s1 = scalar_lea.vmem %s60_s17, 6144  ;;  %p3467_p0 = scmp.lt.s32.totalorder %s60_s17, %s60_s17 }
  0x3d   :  { %p3463_p13 = scmp.ne.s32.totalorder %s60_s17, %s3462_s1  ;;  %p3468_p1 = scmp.lt.s32.totalorder %s3462_s1, %s3462_s1 }
  0x3f   :  { %p3469_p2 = por %p3468_p1, %p3467_p0 }
  0x41   :  { %p3470_p3 = pnand %p3469_p2, %p3463_p13 }
  0x43   :  { %3473 = shalt.err (!%p3470_p3)
}
  0x44   :  { %s3512_s3 = smov 64   ;;  %s3513_s18 = smov 4  }
  0x45   :  { %65 = dma.hbm_to_vmem [thread:$0]  %s3690_s5, 6144, %s60_s17, [#allocation9], %s3512_s3, %s3512_s3, %s3513_s18  }
  0x46   :  { %3496 = dma.done.wait [#allocation3], 256  }
  0x47   :  { %3497 = vsyncadd [#allocation3], 4294967040 }
  0x48   :  { %3498 = dma.done.wait [#allocation6], 32768  }
  0x49   :  { %3499 = vsyncadd [#allocation6], 4294934528 }
  0x4a   :  { %3500 = dma.done.wait [#allocation9], 6144  }
  0x4b   :  { %3501 = vsyncadd [#allocation9], 4294961152  ;;  %v2954_v0 = vld [vmem:[#allocation5 + $0x4] ss:$16 sps:$4 sm:$0xff]   ;;  %v2956_v1 = vld [vmem:[#allocation5] ss:$16 sps:$4 sm:$0xff]  }
  0x4c   :  { %493 = vmatprep.subr.bf16.mxu0 %v2954_v0  ;;  %v2957_v2 = vld [vmem:[#allocation5 + $0x24] ss:$16 sps:$4 sm:$0xff]   ;;  %v2959_v3 = vld [vmem:[#allocation5 + $0x20] ss:$16 sps:$4 sm:$0xff]   ;;  %v3002_v13 = vld [vmem:[#allocation5 + $0xc] ss:$16 sps:$4 sm:$0xff]  }
  0x4d   :  { %494 = vmatpush1.bf16.msra.mxu0 %v2956_v1  ;;  %v2960_v4 = vld [vmem:[#allocation5 + $0x44] ss:$16 sps:$4 sm:$0xff]   ;;  %v2962_v5 = vld [vmem:[#allocation5 + $0x40] ss:$16 sps:$4 sm:$0xff]   ;;  %v3004_v14 = vld [vmem:[#allocation5 + $0x8] ss:$16 sps:$4 sm:$0xff]   ;;  %534 = vmatprep.subr.bf16.mxu1 %v3002_v13 }
  0x4e   :  { %495 = vmatprep.subr.bf16.mxu0 %v2957_v2  ;;  %v2963_v6 = vld [vmem:[#allocation5 + $0x64] ss:$16 sps:$4 sm:$0xff]   ;;  %v2965_v7 = vld [vmem:[#allocation5 + $0x60] ss:$16 sps:$4 sm:$0xff]   ;;  %v82_v15 = vld [vmem:[#allocation2 + $0x8] sm:$0xff]  ;;  %535 = vmatpush1.bf16.msra.mxu1 %v3004_v14  ;;  %s3514_s8 = smov [#allocation10]  }
  0x4f   :  { %v2966_v8 = vld [vmem:[#allocation5 + $0x84] ss:$16 sps:$4 sm:$0xff]   ;;  %v2968_v9 = vld [vmem:[#allocation5 + $0x80] ss:$16 sps:$4 sm:$0xff]   ;;  %v84_v17 = vmax.f32 %v82_v15, 0.0  ;;  %s2543_s9 = sshll.u32 %s3514_s8, 4  ;;  %s2544_s9 = int_to_ptr.vmem [resolvable:$true] %s2543_s9 }
  0x50   :  { %v2969_v10 = vld [vmem:[#allocation5 + $0xa4] ss:$16 sps:$4 sm:$0xff]   ;;  %v2971_v11 = vld [vmem:[#allocation5 + $0xa0] ss:$16 sps:$4 sm:$0xff]   ;;  %v3005_v19 = vld [vmem:[#allocation5 + $0x2c] ss:$16 sps:$4 sm:$0xff]   ;;  %p3479_p5 = scmp.lt.s32.totalorder %s2544_s9, %s2544_s9 }
  0x51   :  { %496 = vmatpush1.bf16.msra.mxu0 %v2959_v3  ;;  %v2972_v12 = vld [vmem:[#allocation5 + $0xc4] ss:$16 sps:$4 sm:$0xff]   ;;  %v2974_v16 = vld [vmem:[#allocation5 + $0xc0] ss:$16 sps:$4 sm:$0xff]   ;;  %v86_v20 = vpack.c.bf16 %v84_v17, %v84_v17  ;;  %v3007_v21 = vld [vmem:[#allocation5 + $0x28] ss:$16 sps:$4 sm:$0xff]   ;;  %536 = vmatprep.subr.bf16.mxu1 %v3005_v19 }
  0x52   :  { %497 = vmatprep.subr.bf16.mxu0 %v2960_v4  ;;  %v2975_v18 = vld [vmem:[#allocation5 + $0xe4] ss:$16 sps:$4 sm:$0xff]   ;;  %v3008_v22 = vld [vmem:[#allocation5 + $0x4c] ss:$16 sps:$4 sm:$0xff]   ;;  %v2977_v23 = vld [vmem:[#allocation5 + $0xe0] ss:$16 sps:$4 sm:$0xff]   ;;  %537 = vmatpush1.bf16.msra.mxu1 %v3007_v21 }
  0x53   :  { %525 = vmatprep.mubr.bf16.mxu0 %v86_v20  ;;  %v2978_v24 = vld [vmem:[#allocation5 + $0x104] ss:$16 sps:$4 sm:$0xff]   ;;  %566 = vmatprep.mubr.bf16.mxu1 %v86_v20  ;;  %v3010_v25 = vld [vmem:[#allocation5 + $0x48] ss:$16 sps:$4 sm:$0xff]   ;;  %v3011_v26 = vld [vmem:[#allocation5 + $0x6c] ss:$16 sps:$4 sm:$0xff]  }
  0x54   :  { %538 = vmatprep.subr.bf16.mxu1 %v3008_v22  ;;  %v2980_v27 = vld [vmem:[#allocation5 + $0x100] ss:$16 sps:$4 sm:$0xff]   ;;  %v2981_v28 = vld [vmem:[#allocation5 + $0x124] ss:$16 sps:$4 sm:$0xff]   ;;  %v3013_v29 = vld [vmem:[#allocation5 + $0x68] ss:$16 sps:$4 sm:$0xff]  }
  0x55   :  { %498 = vmatpush1.bf16.msra.mxu0 %v2962_v5  ;;  %v3014_v30 = vld [vmem:[#allocation5 + $0x8c] ss:$16 sps:$4 sm:$0xff]   ;;  %v2983_v31 = vld [vmem:[#allocation5 + $0x120] ss:$16 sps:$4 sm:$0xff]   ;;  %v2984_v32 = vld [vmem:[#allocation5 + $0x144] ss:$16 sps:$4 sm:$0xff]  }
  0x56   :  { %499 = vmatprep.subr.bf16.mxu0 %v2963_v6  ;;  %539 = vmatpush1.bf16.msra.mxu1 %v3010_v25  ;;  %v3016_v33 = vld [vmem:[#allocation5 + $0x88] ss:$16 sps:$4 sm:$0xff]   ;;  %v3017_v34 = vld [vmem:[#allocation5 + $0xac] ss:$16 sps:$4 sm:$0xff]   ;;  %v2986_v35 = vld [vmem:[#allocation5 + $0x140] ss:$16 sps:$4 sm:$0xff]  }
  0x57   :  { %540 = vmatprep.subr.bf16.mxu1 %v3011_v26  ;;  %v2987_v36 = vld [vmem:[#allocation5 + $0x164] ss:$16 sps:$4 sm:$0xff]   ;;  %v3019_v37 = vld [vmem:[#allocation5 + $0xa8] ss:$16 sps:$4 sm:$0xff]   ;;  %v3020_v38 = vld [vmem:[#allocation5 + $0xcc] ss:$16 sps:$4 sm:$0xff]  }
  0x58   :  { %v2989_v39 = vld [vmem:[#allocation5 + $0x160] ss:$16 sps:$4 sm:$0xff]   ;;  %v2990_v40 = vld [vmem:[#allocation5 + $0x184] ss:$16 sps:$4 sm:$0xff]   ;;  %v3022_v41 = vld [vmem:[#allocation5 + $0xc8] ss:$16 sps:$4 sm:$0xff]  }
  0x59   :  { %500 = vmatpush1.bf16.msra.mxu0 %v2965_v7  ;;  %v3023_v42 = vld [vmem:[#allocation5 + $0xec] ss:$16 sps:$4 sm:$0xff]   ;;  %v2992_v43 = vld [vmem:[#allocation5 + $0x180] ss:$16 sps:$4 sm:$0xff]   ;;  %v2993_v44 = vld [vmem:[#allocation5 + $0x1a4] ss:$16 sps:$4 sm:$0xff]  }
  0x5a   :  { %501 = vmatprep.subr.bf16.mxu0 %v2966_v8  ;;  %541 = vmatpush1.bf16.msra.mxu1 %v3013_v29  ;;  %v3025_v45 = vld [vmem:[#allocation5 + $0xe8] ss:$16 sps:$4 sm:$0xff]   ;;  %v3026_v46 = vld [vmem:[#allocation5 + $0x10c] ss:$16 sps:$4 sm:$0xff]   ;;  %v2995_v47 = vld [vmem:[#allocation5 + $0x1a0] ss:$16 sps:$4 sm:$0xff]  }
  0x5b   :  { %542 = vmatprep.subr.bf16.mxu1 %v3014_v30  ;;  %v2996_v48 = vld [vmem:[#allocation5 + $0x1c4] ss:$16 sps:$4 sm:$0xff]   ;;  %v2998_v49 = vld [vmem:[#allocation5 + $0x1c0] ss:$16 sps:$4 sm:$0xff]   ;;  %v3028_v50 = vld [vmem:[#allocation5 + $0x108] ss:$16 sps:$4 sm:$0xff]  }
  0x5c   :  { %v3029_v51 = vld [vmem:[#allocation5 + $0x12c] ss:$16 sps:$4 sm:$0xff]   ;;  %v81_v52 = vld [vmem:[#allocation2] sm:$0xff]  ;;  %v3031_v54 = vld [vmem:[#allocation5 + $0x128] ss:$16 sps:$4 sm:$0xff]   ;;  %s3474_s10 = scalar_lea.vmem %s2544_s9, 128 }
  0x5d   :  { %502 = vmatpush1.bf16.msra.mxu0 %v2968_v9  ;;  %v2999_v53 = vld [vmem:[#allocation5 + $0x1e4] ss:$16 sps:$4 sm:$0xff]   ;;  %v83_v55 = vmax.f32 %v81_v52, 0.0  ;;  %v3032_v56 = vld [vmem:[#allocation5 + $0x14c] ss:$16 sps:$4 sm:$0xff]   ;;  %p3475_p4 = scmp.ne.s32.totalorder %s2544_s9, %s3474_s10  ;;  %p3480_p6 = scmp.lt.s32.totalorder %s3474_s10, %s3474_s10 }
  0x5e   :  { %503 = vmatprep.subr.bf16.mxu0 %v2969_v10  ;;  %543 = vmatpush1.bf16.msra.mxu1 %v3016_v33  ;;  %v3001_v57 = vld [vmem:[#allocation5 + $0x1e0] ss:$16 sps:$4 sm:$0xff]   ;;  %v3052_v58 = vld [vmem:[#allocation7 + $0x4] ss:$24 sps:$4 sm:$0xff]   ;;  %v3034_v59 = vld [vmem:[#allocation5 + $0x148] ss:$16 sps:$4 sm:$0xff]  }
  0x5f   :  { %544 = vmatprep.subr.bf16.mxu1 %v3017_v34  ;;  %v85_v60 = vpack.c.bf16 %v83_v55, %v83_v55  ;;  %v3035_v61 = vld [vmem:[#allocation5 + $0x16c] ss:$16 sps:$4 sm:$0xff]   ;;  %v3050_v62 = vld [vmem:[#allocation7] ss:$24 sps:$4 sm:$0xff]   ;;  %v3056_v2 = vld [vmem:[#allocation7 + $0x30] ss:$24 sps:$4 sm:$0xff]   ;;  %p3481_p7 = por %p3480_p6, %p3479_p5 }
  0x60   :  { %v3058_v63 = vld [vmem:[#allocation7 + $0x34] ss:$24 sps:$4 sm:$0xff]   ;;  %v3037_v0 = vld [vmem:[#allocation5 + $0x168] ss:$16 sps:$4 sm:$0xff]   ;;  %v3064_v3 = vld [vmem:[#allocation7 + $0x64] ss:$24 sps:$4 sm:$0xff]  }
  0x61   :  { %504 = vmatpush1.bf16.msra.mxu0 %v2971_v11  ;;  %v3038_v1 = vld [vmem:[#allocation5 + $0x18c] ss:$16 sps:$4 sm:$0xff]   ;;  %v3040_v4 = vld [vmem:[#allocation5 + $0x188] ss:$16 sps:$4 sm:$0xff]   ;;  %p3482_p8 = pnand %p3481_p7, %p3475_p4 }
  0x62   :  { %505 = vmatprep.subr.bf16.mxu0 %v2972_v12  ;;  %545 = vmatpush1.bf16.msra.mxu1 %v3019_v37  ;;  %v3041_v5 = vld [vmem:[#allocation5 + $0x1ac] ss:$16 sps:$4 sm:$0xff]   ;;  %v3062_v6 = vld [vmem:[#allocation7 + $0x60] ss:$24 sps:$4 sm:$0xff]   ;;  %v3068_v10 = vld [vmem:[#allocation7 + $0x90] ss:$24 sps:$4 sm:$0xff]  }
  0x63   :  { %546 = vmatprep.subr.bf16.mxu1 %v3020_v38  ;;  %v3070_v7 = vld [vmem:[#allocation7 + $0x94] ss:$24 sps:$4 sm:$0xff]   ;;  %v3043_v8 = vld [vmem:[#allocation5 + $0x1a8] ss:$16 sps:$4 sm:$0xff]   ;;  %v3076_v11 = vld [vmem:[#allocation7 + $0xc4] ss:$24 sps:$4 sm:$0xff]  }
  0x64   :  { %v3044_v9 = vld [vmem:[#allocation5 + $0x1cc] ss:$16 sps:$4 sm:$0xff]   ;;  %v3046_v12 = vld [vmem:[#allocation5 + $0x1c8] ss:$16 sps:$4 sm:$0xff]  }
  0x65   :  { %506 = vmatpush1.bf16.msra.mxu0 %v2974_v16  ;;  %v3047_v13 = vld [vmem:[#allocation5 + $0x1ec] ss:$16 sps:$4 sm:$0xff]   ;;  %v3074_v14 = vld [vmem:[#allocation7 + $0xc0] ss:$24 sps:$4 sm:$0xff]   ;;  %v3092_v26 = vld [vmem:[#allocation7 + $0x150] ss:$24 sps:$4 sm:$0xff]  }
  0x66   :  { %507 = vmatprep.subr.bf16.mxu0 %v2975_v18  ;;  %547 = vmatpush1.bf16.msra.mxu1 %v3022_v41  ;;  %v3049_v15 = vld [vmem:[#allocation5 + $0x1e8] ss:$16 sps:$4 sm:$0xff]   ;;  %v3055_v16 = vld [vmem:[#allocation7 + $0xc] ss:$24 sps:$4 sm:$0xff]   ;;  %v3061_v21 = vld [vmem:[#allocation7 + $0x3c] ss:$24 sps:$4 sm:$0xff]  }
  0x67   :  { %548 = vmatprep.subr.bf16.mxu1 %v3023_v42  ;;  %v3082_v17 = vld [vmem:[#allocation7 + $0xf4] ss:$24 sps:$4 sm:$0xff]   ;;  %v3080_v18 = vld [vmem:[#allocation7 + $0xf0] ss:$24 sps:$4 sm:$0xff]   ;;  %v3088_v19 = vld [vmem:[#allocation7 + $0x124] ss:$24 sps:$4 sm:$0xff]  }
  0x68   :  { %v3053_v20 = vld [vmem:[#allocation7 + $0x8] ss:$24 sps:$4 sm:$0xff]   ;;  %v3067_v25 = vld [vmem:[#allocation7 + $0x6c] ss:$24 sps:$4 sm:$0xff]   ;;  %v3073_v29 = vld [vmem:[#allocation7 + $0x9c] ss:$24 sps:$4 sm:$0xff]  }
  0x69   :  { %508 = vmatpush1.bf16.msra.mxu0 %v2977_v23  ;;  %v3086_v22 = vld [vmem:[#allocation7 + $0x120] ss:$24 sps:$4 sm:$0xff]   ;;  %v3094_v23 = vld [vmem:[#allocation7 + $0x154] ss:$24 sps:$4 sm:$0xff]   ;;  %v3104_v34 = vld [vmem:[#allocation7 + $0x1b0] ss:$24 sps:$4 sm:$0xff]  }
  0x6a   :  { %509 = vmatprep.subr.bf16.mxu0 %v2978_v24  ;;  %549 = vmatpush1.bf16.msra.mxu1 %v3025_v45  ;;  %v3059_v24 = vld [vmem:[#allocation7 + $0x38] ss:$24 sps:$4 sm:$0xff]   ;;  %v3079_v33 = vld [vmem:[#allocation7 + $0xcc] ss:$24 sps:$4 sm:$0xff]   ;;  %v3085_v37 = vld [vmem:[#allocation7 + $0xfc] ss:$24 sps:$4 sm:$0xff]  }
  0x6b   :  { %550 = vmatprep.subr.bf16.mxu1 %v3026_v46  ;;  %v3098_v30 = vld [vmem:[#allocation7 + $0x180] ss:$24 sps:$4 sm:$0xff]   ;;  %v3091_v41 = vld [vmem:[#allocation7 + $0x12c] ss:$24 sps:$4 sm:$0xff]   ;;  %v3116_v42 = vld [vmem:[#allocation7 + $0x210] ss:$24 sps:$4 sm:$0xff]  }
  0x6c   :  { %v3110_v38 = vld [vmem:[#allocation7 + $0x1e0] ss:$24 sps:$4 sm:$0xff]   ;;  %v3097_v45 = vld [vmem:[#allocation7 + $0x15c] ss:$24 sps:$4 sm:$0xff]  }
  0x6d   :  { %510 = vmatpush1.bf16.msra.mxu0 %v2980_v27  ;;  %v3100_v27 = vld [vmem:[#allocation7 + $0x184] ss:$24 sps:$4 sm:$0xff]   ;;  %v3122_v46 = vld [vmem:[#allocation7 + $0x240] ss:$24 sps:$4 sm:$0xff]  }
  0x6e   :  { %511 = vmatprep.subr.bf16.mxu0 %v2981_v28  ;;  %551 = vmatpush1.bf16.msra.mxu1 %v3028_v50  ;;  %v3065_v28 = vld [vmem:[#allocation7 + $0x68] ss:$24 sps:$4 sm:$0xff]   ;;  %v3109_v52 = vld [vmem:[#allocation7 + $0x1bc] ss:$24 sps:$4 sm:$0xff]  }
  0x6f   :  { %552 = vmatprep.subr.bf16.mxu1 %v3029_v51  ;;  %v3128_v50 = vld [vmem:[#allocation7 + $0x270] ss:$24 sps:$4 sm:$0xff]  }
  0x70   :  { %v3101_v51 = vld [vmem:[#allocation7 + $0x188] ss:$24 sps:$4 sm:$0xff]  }
  0x71   :  { %512 = vmatpush1.bf16.msra.mxu0 %v2983_v31  ;;  %v3106_v31 = vld [vmem:[#allocation7 + $0x1b4] ss:$24 sps:$4 sm:$0xff]   ;;  %v3113_v55 = vld [vmem:[#allocation7 + $0x1e8] ss:$24 sps:$4 sm:$0xff]  }
  0x72   :  { %513 = vmatprep.subr.bf16.mxu0 %v2984_v32  ;;  %553 = vmatpush1.bf16.msra.mxu1 %v3031_v54  ;;  %v3071_v32 = vld [vmem:[#allocation7 + $0x98] ss:$24 sps:$4 sm:$0xff]   ;;  %v3115_v54 = vld [vmem:[#allocation7 + $0x1ec] ss:$24 sps:$4 sm:$0xff]  }
  0x73   :  { %554 = vmatprep.subr.bf16.mxu1 %v3032_v56  ;;  %v3121_v56 = vld [vmem:[#allocation7 + $0x21c] ss:$24 sps:$4 sm:$0xff]  }
  0x75   :  { %514 = vmatpush1.bf16.msra.mxu0 %v2986_v35  ;;  %v3112_v35 = vld [vmem:[#allocation7 + $0x1e4] ss:$24 sps:$4 sm:$0xff]  }
  0x76   :  { %515 = vmatprep.subr.bf16.mxu0 %v2987_v36  ;;  %555 = vmatpush1.bf16.msra.mxu1 %v3034_v59  ;;  %v3077_v36 = vld [vmem:[#allocation7 + $0xc8] ss:$24 sps:$4 sm:$0xff]  }
  0x77   :  { %556 = vmatprep.subr.bf16.mxu1 %v3035_v61  ;;  %v3125_v59 = vld [vmem:[#allocation7 + $0x248] ss:$24 sps:$4 sm:$0xff]   ;;  %v3131_v61 = vld [vmem:[#allocation7 + $0x278] ss:$24 sps:$4 sm:$0xff]  }
  0x79   :  { %516 = vmatpush1.bf16.msra.mxu0 %v2989_v39  ;;  %v3118_v39 = vld [vmem:[#allocation7 + $0x214] ss:$24 sps:$4 sm:$0xff]  }
  0x7a   :  { %517 = vmatprep.subr.bf16.mxu0 %v2990_v40  ;;  %557 = vmatpush1.bf16.msra.mxu1 %v3037_v0  ;;  %v3083_v40 = vld [vmem:[#allocation7 + $0xf8] ss:$24 sps:$4 sm:$0xff]  }
  0x7b   :  { %558 = vmatprep.subr.bf16.mxu1 %v3038_v1  ;;  %v3134_v0 = vld [vmem:[#allocation7 + $0x2a0] ss:$24 sps:$4 sm:$0xff]  }
  0x7c   :  { %v3137_v1 = vld [vmem:[#allocation7 + $0x2a8] ss:$24 sps:$4 sm:$0xff]  }
  0x7d   :  { %518 = vmatpush1.bf16.msra.mxu0 %v2992_v43  ;;  %v3124_v43 = vld [vmem:[#allocation7 + $0x244] ss:$24 sps:$4 sm:$0xff]  }
  0x7e   :  { %519 = vmatprep.subr.bf16.mxu0 %v2993_v44  ;;  %559 = vmatpush1.bf16.msra.mxu1 %v3040_v4  ;;  %v3089_v44 = vld [vmem:[#allocation7 + $0x128] ss:$24 sps:$4 sm:$0xff]  }
  0x7f   :  { %560 = vmatprep.subr.bf16.mxu1 %v3041_v5  ;;  %v3140_v4 = vld [vmem:[#allocation7 + $0x2d0] ss:$24 sps:$4 sm:$0xff]  }
  0x80   :  { %v3143_v5 = vld [vmem:[#allocation7 + $0x2d8] ss:$24 sps:$4 sm:$0xff]  }
  0x81   :  { %520 = vmatpush1.bf16.msra.mxu0 %v2995_v47  ;;  %v3130_v47 = vld [vmem:[#allocation7 + $0x274] ss:$24 sps:$4 sm:$0xff]  }
  0x82   :  { %521 = vmatprep.subr.bf16.mxu0 %v2996_v48  ;;  %561 = vmatpush1.bf16.msra.mxu1 %v3043_v8  ;;  %v3095_v48 = vld [vmem:[#allocation7 + $0x158] ss:$24 sps:$4 sm:$0xff]   ;;  %v153_v8 = vlaneseq }
  0x83   :  { %562 = vmatprep.subr.bf16.mxu1 %v3044_v9 }
  0x84   :  { %v3603_v9 = vshrl.u32 %v153_v8, 7  ;;  %v3208_v8 = vld [vmem:[#allocation7 + $0x4e4] ss:$24 sps:$4 sm:$0xff]  }
  0x85   :  { %522 = vmatpush1.bf16.msra.mxu0 %v2998_v49  ;;  %v3103_v49 = vld [vmem:[#allocation7 + $0x18c] ss:$24 sps:$4 sm:$0xff]  }
  0x86   :  { %523 = vmatprep.subr.bf16.mxu0 %v2999_v53  ;;  %563 = vmatpush1.bf16.msra.mxu1 %v3046_v12  ;;  %v3107_v53 = vld [vmem:[#allocation7 + $0x1b8] ss:$24 sps:$4 sm:$0xff]   ;;  %v159_v12 = vsub.s32 1, %v3603_v9 }
  0x87   :  { %564 = vmatprep.subr.bf16.mxu1 %v3047_v13 }
  0x89   :  { %524 = vmatpush1.bf16.msra.mxu0 %v3001_v57  ;;  %v3119_v57 = vld [vmem:[#allocation7 + $0x218] ss:$24 sps:$4 sm:$0xff]  }
  0x8a   :  { %1767 = vmatprep.subr.bf16.mxu0 %v3052_v58  ;;  %565 = vmatpush1.bf16.msra.mxu1 %v3049_v15  ;;  %v3127_v58 = vld [vmem:[#allocation7 + $0x24c] ss:$24 sps:$4 sm:$0xff]  }
  0x8b   :  { %1849 = vmatprep.subr.bf16.mxu1 %v3055_v16 }
  0x8c   :  { %526 = vmatmul.mubr.bf16.vlgmr.msra.gmra.mrb[0].mxu0 %v85_v60 }
  0x8d   :  { %1768 = vmatpush1.bf16.msra.mxu0 %v3050_v62  ;;  %567 = vmatmul.mubr.bf16.vlgmr.msra.gmra.mrb[0].mxu1 %v85_v60  ;;  %v3133_v60 = vld [vmem:[#allocation7 + $0x27c] ss:$24 sps:$4 sm:$0xff]  }
  0x8e   :  { %1769 = vmatprep.subr.bf16.mxu0 %v3058_v63  ;;  %1850 = vmatpush1.bf16.msra.mxu1 %v3053_v20  ;;  %v3136_v62 = vld [vmem:[#allocation7 + $0x2a4] ss:$24 sps:$4 sm:$0xff]  }
  0x8f   :  { %1851 = vmatprep.subr.bf16.mxu1 %v3061_v21  ;;  %v3139_v63 = vld [vmem:[#allocation7 + $0x2ac] ss:$24 sps:$4 sm:$0xff]  }
  0x91   :  { %1770 = vmatpush1.bf16.msra.mxu0 %v3056_v2  ;;  %v3142_v2 = vld [vmem:[#allocation7 + $0x2d4] ss:$24 sps:$4 sm:$0xff]  }
  0x92   :  { %1771 = vmatprep.subr.bf16.mxu0 %v3064_v3  ;;  %1852 = vmatpush1.bf16.msra.mxu1 %v3059_v24  ;;  %v3145_v3 = vld [vmem:[#allocation7 + $0x2dc] ss:$24 sps:$4 sm:$0xff]   ;;  %v3146_v24 = vld [vmem:[#allocation7 + $0x300] ss:$24 sps:$4 sm:$0xff]  }
  0x93   :  { %1853 = vmatprep.subr.bf16.mxu1 %v3067_v25  ;;  %v3149_v25 = vld [vmem:[#allocation7 + $0x308] ss:$24 sps:$4 sm:$0xff]  }
  0x95   :  { %1772 = vmatpush1.bf16.msra.mxu0 %v3062_v6  ;;  %v3148_v6 = vld [vmem:[#allocation7 + $0x304] ss:$24 sps:$4 sm:$0xff]  }
  0x96   :  { %1773 = vmatprep.subr.bf16.mxu0 %v3070_v7  ;;  %1854 = vmatpush1.bf16.msra.mxu1 %v3065_v28  ;;  %v3151_v7 = vld [vmem:[#allocation7 + $0x30c] ss:$24 sps:$4 sm:$0xff]   ;;  %v3157_v28 = vld [vmem:[#allocation7 + $0x33c] ss:$24 sps:$4 sm:$0xff]  }
  0x97   :  { %1855 = vmatprep.subr.bf16.mxu1 %v3073_v29  ;;  %v3152_v29 = vld [vmem:[#allocation7 + $0x330] ss:$24 sps:$4 sm:$0xff]  }
  0x99   :  { %1774 = vmatpush1.bf16.msra.mxu0 %v3068_v10  ;;  %v155_v10 = vsub.s32 0, %v3603_v9 }
  0x9a   :  { %1775 = vmatprep.subr.bf16.mxu0 %v3076_v11  ;;  %1856 = vmatpush1.bf16.msra.mxu1 %v3071_v32  ;;  %v3609_v11 = vld [vmem:[%s3687_s2] sm:$0xf]  ;;  %v3163_v32 = vld [vmem:[#allocation7 + $0x36c] ss:$24 sps:$4 sm:$0xff]  }
  0x9b   :  { %1857 = vmatprep.subr.bf16.mxu1 %v3079_v33  ;;  %v156_v13 = vrot.slane %v3609_v11, %v155_v10  ;;  %v3158_v33 = vld [vmem:[#allocation7 + $0x360] ss:$24 sps:$4 sm:$0xff]  }
  0x9d   :  { %1776 = vmatpush1.bf16.msra.mxu0 %v3074_v14  ;;  %v160_v14 = vrot.slane %v3609_v11, %v159_v12 }
  0x9e   :  { %1777 = vmatprep.subr.bf16.mxu0 %v3082_v17  ;;  %1858 = vmatpush1.bf16.msra.mxu1 %v3077_v36  ;;  %v3169_v36 = vld [vmem:[#allocation7 + $0x39c] ss:$24 sps:$4 sm:$0xff]  }
  0x9f   :  { %1859 = vmatprep.subr.bf16.mxu1 %v3085_v37  ;;  %v167_v37 = vsub.s32 3, %v3603_v9 }
  0xa1   :  { %1778 = vmatpush1.bf16.msra.mxu0 %v3080_v18 }
  0xa2   :  { %1779 = vmatprep.subr.bf16.mxu0 %v3088_v19  ;;  %1860 = vmatpush1.bf16.msra.mxu1 %v3083_v40  ;;  %v3172_v40 = vld [vmem:[#allocation7 + $0x3c4] ss:$24 sps:$4 sm:$0xff]  }
  0xa3   :  { %1861 = vmatprep.subr.bf16.mxu1 %v3091_v41  ;;  %v3175_v41 = vld [vmem:[#allocation7 + $0x3cc] ss:$24 sps:$4 sm:$0xff]  }
  0xa5   :  { %1780 = vmatpush1.bf16.msra.mxu0 %v3086_v22 }
  0xa6   :  { %1781 = vmatprep.subr.bf16.mxu0 %v3094_v23  ;;  %1862 = vmatpush1.bf16.msra.mxu1 %v3089_v44  ;;  %v3173_v44 = vld [vmem:[#allocation7 + $0x3c8] ss:$24 sps:$4 sm:$0xff]  }
  0xa7   :  { %1863 = vmatprep.subr.bf16.mxu1 %v3097_v45 }
  0xa9   :  { %1782 = vmatpush1.bf16.msra.mxu0 %v3092_v26 }
  0xaa   :  { %1783 = vmatprep.subr.bf16.mxu0 %v3100_v27  ;;  %1864 = vmatpush1.bf16.msra.mxu1 %v3095_v48  ;;  %v3154_v27 = vld [vmem:[#allocation7 + $0x334] ss:$24 sps:$4 sm:$0xff]  }
  0xab   :  { %1865 = vmatprep.subr.bf16.mxu1 %v3103_v49 }
  0xad   :  { %1784 = vmatpush1.bf16.msra.mxu0 %v3098_v30  ;;  %v3155_v30 = vld [vmem:[#allocation7 + $0x338] ss:$24 sps:$4 sm:$0xff]  }
  0xae   :  { %1785 = vmatprep.subr.bf16.mxu0 %v3106_v31  ;;  %1866 = vmatpush1.bf16.msra.mxu1 %v3101_v51  ;;  %v3160_v31 = vld [vmem:[#allocation7 + $0x364] ss:$24 sps:$4 sm:$0xff]  }
  0xaf   :  { %1867 = vmatprep.subr.bf16.mxu1 %v3109_v52  ;;  %v3176_v52 = vld [vmem:[#allocation7 + $0x3f0] ss:$24 sps:$4 sm:$0xff]  }
  0xb1   :  { %1786 = vmatpush1.bf16.msra.mxu0 %v3104_v34  ;;  %v3161_v34 = vld [vmem:[#allocation7 + $0x368] ss:$24 sps:$4 sm:$0xff]  }
  0xb2   :  { %1787 = vmatprep.subr.bf16.mxu0 %v3112_v35  ;;  %1868 = vmatpush1.bf16.msra.mxu1 %v3107_v53  ;;  %v3166_v35 = vld [vmem:[#allocation7 + $0x394] ss:$24 sps:$4 sm:$0xff]   ;;  %v3179_v53 = vld [vmem:[#allocation7 + $0x3f8] ss:$24 sps:$4 sm:$0xff]  }
  0xb3   :  { %1869 = vmatprep.subr.bf16.mxu1 %v3115_v54 }
  0xb5   :  { %1788 = vmatpush1.bf16.msra.mxu0 %v3110_v38  ;;  %v3164_v38 = vld [vmem:[#allocation7 + $0x390] ss:$24 sps:$4 sm:$0xff]  }
  0xb6   :  { %1789 = vmatprep.subr.bf16.mxu0 %v3118_v39  ;;  %1870 = vmatpush1.bf16.msra.mxu1 %v3113_v55  ;;  %v3167_v39 = vld [vmem:[#allocation7 + $0x398] ss:$24 sps:$4 sm:$0xff]   ;;  %v3184_v55 = vld [vmem:[#allocation7 + $0x424] ss:$24 sps:$4 sm:$0xff]  }
  0xb7   :  { %1871 = vmatprep.subr.bf16.mxu1 %v3121_v56  ;;  %v3187_v56 = vld [vmem:[#allocation7 + $0x42c] ss:$24 sps:$4 sm:$0xff]  }
  0xb9   :  { %1790 = vmatpush1.bf16.msra.mxu0 %v3116_v42  ;;  %v168_v42 = vrot.slane %v3609_v11, %v167_v37 }
  0xba   :  { %1791 = vmatprep.subr.bf16.mxu0 %v3124_v43  ;;  %1872 = vmatpush1.bf16.msra.mxu1 %v3119_v57  ;;  %v3170_v43 = vld [vmem:[#allocation7 + $0x3c0] ss:$24 sps:$4 sm:$0xff]  }
  0xbb   :  { %1873 = vmatprep.subr.bf16.mxu1 %v3127_v58  ;;  %v3182_v58 = vld [vmem:[#allocation7 + $0x420] ss:$24 sps:$4 sm:$0xff]  }
  0xbd   :  { %1792 = vmatpush1.bf16.msra.mxu0 %v3122_v46  ;;  %v3178_v46 = vld [vmem:[#allocation7 + $0x3f4] ss:$24 sps:$4 sm:$0xff]  }
  0xbe   :  { %1793 = vmatprep.subr.bf16.mxu0 %v3130_v47  ;;  %1874 = vmatpush1.bf16.msra.mxu1 %v3125_v59  ;;  %v3181_v47 = vld [vmem:[#allocation7 + $0x3fc] ss:$24 sps:$4 sm:$0xff]   ;;  %v3185_v59 = vld [vmem:[#allocation7 + $0x428] ss:$24 sps:$4 sm:$0xff]  }
  0xbf   :  { %1875 = vmatprep.subr.bf16.mxu1 %v3133_v60  ;;  %v3190_v60 = vld [vmem:[#allocation7 + $0x454] ss:$24 sps:$4 sm:$0xff]  }
  0xc1   :  { %1794 = vmatpush1.bf16.msra.mxu0 %v3128_v50 }
  0xc2   :  { %1876 = vmatpush1.bf16.msra.mxu1 %v3131_v61  ;;  %1795 = vmatprep.subr.bf16.mxu0 %v3136_v62  ;;  %v3193_v61 = vld [vmem:[#allocation7 + $0x45c] ss:$24 sps:$4 sm:$0xff]   ;;  %v3188_v62 = vld [vmem:[#allocation7 + $0x450] ss:$24 sps:$4 sm:$0xff]  }
  0xc3   :  { %1877 = vmatprep.subr.bf16.mxu1 %v3139_v63  ;;  %v3191_v63 = vld [vmem:[#allocation7 + $0x458] ss:$24 sps:$4 sm:$0xff]  }
  0xc5   :  { %1796 = vmatpush1.bf16.msra.mxu0 %v3134_v0  ;;  %v3196_v0 = vld [vmem:[#allocation7 + $0x484] ss:$24 sps:$4 sm:$0xff]  }
  0xc6   :  { %1878 = vmatpush1.bf16.msra.mxu1 %v3137_v1  ;;  %1797 = vmatprep.subr.bf16.mxu0 %v3142_v2  ;;  %v3199_v1 = vld [vmem:[#allocation7 + $0x48c] ss:$24 sps:$4 sm:$0xff]   ;;  %v3194_v2 = vld [vmem:[#allocation7 + $0x480] ss:$24 sps:$4 sm:$0xff]  }
  0xc7   :  { %1879 = vmatprep.subr.bf16.mxu1 %v3145_v3  ;;  %v3197_v3 = vld [vmem:[#allocation7 + $0x488] ss:$24 sps:$4 sm:$0xff]  }
  0xc9   :  { %1798 = vmatpush1.bf16.msra.mxu0 %v3140_v4  ;;  %v3202_v4 = vld [vmem:[#allocation7 + $0x4b4] ss:$24 sps:$4 sm:$0xff]  }
  0xca   :  { %1880 = vmatpush1.bf16.msra.mxu1 %v3143_v5  ;;  %1808 = vmatprep.subr.bf16.mxu0 %v3148_v6  ;;  %v3205_v5 = vld [vmem:[#allocation7 + $0x4bc] ss:$24 sps:$4 sm:$0xff]   ;;  %v3200_v6 = vld [vmem:[#allocation7 + $0x4b0] ss:$24 sps:$4 sm:$0xff]  }
  0xcb   :  { %1890 = vmatprep.subr.bf16.mxu1 %v3151_v7  ;;  %v3203_v7 = vld [vmem:[#allocation7 + $0x4b8] ss:$24 sps:$4 sm:$0xff]  }
 0x15f   :  { %v527_v15 = vpop.f32.mrb[0].mxu0 }
 0x160   :  { %v528_v16 = vadd.f32 %v527_v15, %v156_v13  ;;  %v529_v17 = vpop.f32.mrb[1].mxu0  ;;  %v3630_v45 = vpop.f32.mrb[0].mxu1  ;;  %v3211_v13 = vld [vmem:[#allocation7 + $0x4ec] ss:$24 sps:$4 sm:$0xff]   ;;  %v3209_v15 = vld [vmem:[#allocation7 + $0x4e8] ss:$24 sps:$4 sm:$0xff]  }
 0x161   :  { %v530_v18 = vadd.f32 %v529_v17, %v160_v14  ;;  %v531_v19 = vpop.f32.mrb[2].mxu0  ;;  %v570_v48 = vpop.f32.mrb[1].mxu1  ;;  %v3206_v14 = vld [vmem:[#allocation7 + $0x4e0] ss:$24 sps:$4 sm:$0xff]   ;;  %v3217_v17 = vld [vmem:[#allocation7 + $0x51c] ss:$24 sps:$4 sm:$0xff]  }
 0x162   :  { %v575_v20 = vmax.f32 %v528_v16, 0.0  ;;  %v532_v21 = vpop.f32.mrb[3].mxu0  ;;  %v571_v49 = vadd.f32 %v570_v48, %v168_v42  ;;  %v572_v50 = vpop.f32.mrb[2].mxu1  ;;  %v3214_v16 = vld [vmem:[#allocation7 + $0x514] ss:$24 sps:$4 sm:$0xff]  }
 0x163   :  { %v576_v22 = vmax.f32 %v530_v18, 0.0  ;;  %v573_v51 = vpop.f32.mrb[3].mxu1  ;;  %v3212_v18 = vld [vmem:[#allocation7 + $0x510] ss:$24 sps:$4 sm:$0xff]   ;;  %v3223_v21 = vld [vmem:[#allocation7 + $0x54c] ss:$24 sps:$4 sm:$0xff]  }
 0x164   :  { %v3620_v26 = vpack.c.bf16 %v575_v20, %v575_v20  ;;  %v578_v54 = vmax.f32 %v571_v49, 0.0  ;;  %v3215_v19 = vld [vmem:[#allocation7 + $0x518] ss:$24 sps:$4 sm:$0xff]   ;;  %v3220_v20 = vld [vmem:[#allocation7 + $0x544] ss:$24 sps:$4 sm:$0xff]   ;;  %v3340_v48 = vld [vmem:[#allocation8 + $0x48] sm:$0xff]  }
 0x165   :  { %v3618_v23 = vpack.c.bf16 %v576_v22, %v576_v22  ;;  %v163_v22 = vsub.s32 2, %v3603_v9  ;;  %v3244_v42 = vld [vmem:[#allocation7 + $0x14] ss:$24 sps:$4 sm:$0xff]   ;;  %v3245_v49 = vld [vmem:[#allocation7 + $0x40] ss:$24 sps:$4 sm:$0xff]  }
 0x166   :  { %v3632_v57 = vpack.c.bf16 %v578_v54, %v578_v54  ;;  %v3250_v50 = vld [vmem:[#allocation7 + $0x74] ss:$24 sps:$4 sm:$0xff]   ;;  %v3253_v54 = vld [vmem:[#allocation7 + $0xa4] ss:$24 sps:$4 sm:$0xff]  }
 0x167   :  { %1799 = vmatprep.mubr.bf16.mxu0 %v3618_v23  ;;  %1881 = vmatprep.mubr.bf16.mxu1 %v3618_v23  ;;  %v3341_v51 = vld [vmem:[#allocation8 + $0x8] sm:$0xff]  }
 0x168   :  { %1800 = vmatmul.mubr.bf16.vlgmr.msra.gmra.mrb[4].mxu0 %v3620_v26  ;;  %1882 = vmatmul.mubr.bf16.vlgmr.msra.gmra.mrb[4].mxu1 %v3620_v26 }
 0x169   :  { %1809 = vmatpush1.bf16.msra.mxu0 %v3146_v24  ;;  %1891 = vmatpush1.bf16.msra.mxu1 %v3149_v25  ;;  %v3218_v24 = vld [vmem:[#allocation7 + $0x540] ss:$24 sps:$4 sm:$0xff]  }
 0x16a   :  { %1810 = vmatprep.subr.bf16.mxu0 %v3154_v27  ;;  %1892 = vmatprep.subr.bf16.mxu1 %v3157_v28  ;;  %v3221_v25 = vld [vmem:[#allocation7 + $0x548] ss:$24 sps:$4 sm:$0xff]   ;;  %v3226_v27 = vld [vmem:[#allocation7 + $0x574] ss:$24 sps:$4 sm:$0xff]  }
 0x16b   :  { %1840 = vmatprep.mubr.bf16.mxu0 %v3632_v57  ;;  %1922 = vmatprep.mubr.bf16.mxu1 %v3632_v57  ;;  %v3229_v28 = vld [vmem:[#allocation7 + $0x57c] ss:$24 sps:$4 sm:$0xff]  }
 0x16d   :  { %1811 = vmatpush1.bf16.msra.mxu0 %v3152_v29  ;;  %1893 = vmatpush1.bf16.msra.mxu1 %v3155_v30  ;;  %v164_v29 = vrot.slane %v3609_v11, %v163_v22  ;;  %v3224_v30 = vld [vmem:[#allocation7 + $0x570] ss:$24 sps:$4 sm:$0xff]  }
 0x16e   :  { %1812 = vmatprep.subr.bf16.mxu0 %v3160_v31  ;;  %1894 = vmatprep.subr.bf16.mxu1 %v3163_v32  ;;  %v3227_v31 = vld [vmem:[#allocation7 + $0x578] ss:$24 sps:$4 sm:$0xff]   ;;  %v3232_v32 = vld [vmem:[#allocation7 + $0x5a4] ss:$24 sps:$4 sm:$0xff]  }
 0x16f   :  { %v3236_v11 = vld [vmem:[#allocation7 + $0x5d0] ss:$24 sps:$4 sm:$0xff]  }
 0x171   :  { %1813 = vmatpush1.bf16.msra.mxu0 %v3158_v33  ;;  %1895 = vmatpush1.bf16.msra.mxu1 %v3161_v34  ;;  %v3235_v33 = vld [vmem:[#allocation7 + $0x5ac] ss:$24 sps:$4 sm:$0xff]   ;;  %v569_v34 = vadd.f32 %v3630_v45, %v164_v29  ;;  %v3287_v29 = vld [vmem:[#allocation7 + $0x2e0] ss:$24 sps:$4 sm:$0xff]  }
 0x172   :  { %1814 = vmatprep.subr.bf16.mxu0 %v3166_v35  ;;  %1896 = vmatprep.subr.bf16.mxu1 %v3169_v36  ;;  %v3230_v35 = vld [vmem:[#allocation7 + $0x5a0] ss:$24 sps:$4 sm:$0xff]   ;;  %v3247_v45 = vld [vmem:[#allocation7 + $0x44] ss:$24 sps:$4 sm:$0xff]  }
 0x173   :  { %v3233_v36 = vld [vmem:[#allocation7 + $0x5a8] ss:$24 sps:$4 sm:$0xff]  }
 0x175   :  { %1815 = vmatpush1.bf16.msra.mxu0 %v3164_v38  ;;  %1897 = vmatpush1.bf16.msra.mxu1 %v3167_v39  ;;  %v3238_v38 = vld [vmem:[#allocation7 + $0x5d4] ss:$24 sps:$4 sm:$0xff]  }
 0x176   :  { %1816 = vmatprep.subr.bf16.mxu0 %v3172_v40  ;;  %1898 = vmatprep.subr.bf16.mxu1 %v3175_v41  ;;  %v3241_v39 = vld [vmem:[#allocation7 + $0x5dc] ss:$24 sps:$4 sm:$0xff]   ;;  %v577_v40 = vmax.f32 %v569_v34, 0.0  ;;  %v3239_v41 = vld [vmem:[#allocation7 + $0x5d8] ss:$24 sps:$4 sm:$0xff]  }
 0x177   :  { %v3298_v34 = vld [vmem:[#allocation7 + $0x374] ss:$24 sps:$4 sm:$0xff]  }
 0x179   :  { %1817 = vmatpush1.bf16.msra.mxu0 %v3170_v43  ;;  %1899 = vmatpush1.bf16.msra.mxu1 %v3173_v44  ;;  %v3641_v43 = vpack.c.bf16 %v577_v40, %v577_v40  ;;  %v3242_v44 = vld [vmem:[#allocation7 + $0x10] ss:$24 sps:$4 sm:$0xff]  }
 0x17a   :  { %1818 = vmatprep.subr.bf16.mxu0 %v3178_v46  ;;  %1900 = vmatprep.subr.bf16.mxu1 %v3181_v47  ;;  %v3338_v46 = vld [vmem:[#allocation8 + $0x40] sm:$0xff]   ;;  %v3302_v40 = vld [vmem:[#allocation7 + $0x3d0] ss:$24 sps:$4 sm:$0xff]  }
 0x17b   :  { %v3339_v47 = vld [vmem:[#allocation8] sm:$0xff]  }
 0x17d   :  { %1819 = vmatpush1.bf16.msra.mxu0 %v3176_v52  ;;  %1901 = vmatpush1.bf16.msra.mxu1 %v3179_v53  ;;  %v3342_v52 = vld [vmem:[#allocation8 + $0x50] sm:$0xff]  }
 0x17e   :  { %1820 = vmatprep.subr.bf16.mxu0 %v3184_v55  ;;  %1902 = vmatprep.subr.bf16.mxu1 %v3187_v56  ;;  %v3248_v53 = vld [vmem:[#allocation7 + $0x70] ss:$24 sps:$4 sm:$0xff]   ;;  %v3344_v56 = vld [vmem:[#allocation8 + $0x58] sm:$0xff]  }
 0x17f   :  { %v3343_v55 = vld [vmem:[#allocation8 + $0x10] sm:$0xff]  }
 0x181   :  { %1821 = vmatpush1.bf16.msra.mxu0 %v3182_v58  ;;  %1903 = vmatpush1.bf16.msra.mxu1 %v3185_v59  ;;  %v3251_v58 = vld [vmem:[#allocation7 + $0xa0] ss:$24 sps:$4 sm:$0xff]  }
 0x182   :  { %1822 = vmatprep.subr.bf16.mxu0 %v3190_v60  ;;  %1904 = vmatprep.subr.bf16.mxu1 %v3193_v61  ;;  %v3345_v59 = vld [vmem:[#allocation8 + $0x18] sm:$0xff]   ;;  %v3346_v60 = vld [vmem:[#allocation8 + $0x60] sm:$0xff]   ;;  %v3254_v61 = vld [vmem:[#allocation7 + $0xd0] ss:$24 sps:$4 sm:$0xff]  }
 0x185   :  { %1823 = vmatpush1.bf16.msra.mxu0 %v3188_v62  ;;  %1905 = vmatpush1.bf16.msra.mxu1 %v3191_v63  ;;  %v3259_v62 = vld [vmem:[#allocation7 + $0x104] ss:$24 sps:$4 sm:$0xff]  }
 0x186   :  { %1824 = vmatprep.subr.bf16.mxu0 %v3196_v0  ;;  %1906 = vmatprep.subr.bf16.mxu1 %v3199_v1  ;;  %v3347_v63 = vld [vmem:[#allocation8 + $0x20] sm:$0xff]   ;;  %v3348_v0 = vld [vmem:[#allocation8 + $0x68] sm:$0xff]  }
 0x187   :  { %v3257_v1 = vld [vmem:[#allocation7 + $0x100] ss:$24 sps:$4 sm:$0xff]  }
 0x189   :  { %1825 = vmatpush1.bf16.msra.mxu0 %v3194_v2  ;;  %1907 = vmatpush1.bf16.msra.mxu1 %v3197_v3  ;;  %v3262_v2 = vld [vmem:[#allocation7 + $0x134] ss:$24 sps:$4 sm:$0xff]  }
 0x18a   :  { %1826 = vmatprep.subr.bf16.mxu0 %v3202_v4  ;;  %1908 = vmatprep.subr.bf16.mxu1 %v3205_v5  ;;  %v3349_v3 = vld [vmem:[#allocation8 + $0x28] sm:$0xff]   ;;  %v3265_v5 = vld [vmem:[#allocation7 + $0x164] ss:$24 sps:$4 sm:$0xff]  }
 0x18b   :  { %v3260_v4 = vld [vmem:[#allocation7 + $0x130] ss:$24 sps:$4 sm:$0xff]  }
 0x18d   :  { %1827 = vmatpush1.bf16.msra.mxu0 %v3200_v6  ;;  %1909 = vmatpush1.bf16.msra.mxu1 %v3203_v7  ;;  %v3263_v6 = vld [vmem:[#allocation7 + $0x160] ss:$24 sps:$4 sm:$0xff]   ;;  %v3268_v7 = vld [vmem:[#allocation7 + $0x194] ss:$24 sps:$4 sm:$0xff]  }
 0x18e   :  { %1828 = vmatprep.subr.bf16.mxu0 %v3208_v8  ;;  %1910 = vmatprep.subr.bf16.mxu1 %v3211_v13  ;;  %v3266_v8 = vld [vmem:[#allocation7 + $0x190] ss:$24 sps:$4 sm:$0xff]   ;;  %v3271_v13 = vld [vmem:[#allocation7 + $0x1c4] ss:$24 sps:$4 sm:$0xff]  }
 0x191   :  { %1829 = vmatpush1.bf16.msra.mxu0 %v3206_v14  ;;  %1911 = vmatpush1.bf16.msra.mxu1 %v3209_v15  ;;  %v3269_v14 = vld [vmem:[#allocation7 + $0x1c0] ss:$24 sps:$4 sm:$0xff]   ;;  %v3274_v15 = vld [vmem:[#allocation7 + $0x1f4] ss:$24 sps:$4 sm:$0xff]  }
 0x192   :  { %1830 = vmatprep.subr.bf16.mxu0 %v3214_v16  ;;  %1912 = vmatprep.subr.bf16.mxu1 %v3217_v17  ;;  %v3272_v16 = vld [vmem:[#allocation7 + $0x1f0] ss:$24 sps:$4 sm:$0xff]   ;;  %v3277_v17 = vld [vmem:[#allocation7 + $0x224] ss:$24 sps:$4 sm:$0xff]  }
 0x195   :  { %1831 = vmatpush1.bf16.msra.mxu0 %v3212_v18  ;;  %1913 = vmatpush1.bf16.msra.mxu1 %v3215_v19  ;;  %v3275_v18 = vld [vmem:[#allocation7 + $0x220] ss:$24 sps:$4 sm:$0xff]   ;;  %v3280_v19 = vld [vmem:[#allocation7 + $0x254] ss:$24 sps:$4 sm:$0xff]  }
 0x196   :  { %1832 = vmatprep.subr.bf16.mxu0 %v3220_v20  ;;  %1914 = vmatprep.subr.bf16.mxu1 %v3223_v21  ;;  %v3278_v20 = vld [vmem:[#allocation7 + $0x250] ss:$24 sps:$4 sm:$0xff]   ;;  %v3283_v21 = vld [vmem:[#allocation7 + $0x284] ss:$24 sps:$4 sm:$0xff]  }
 0x199   :  { %1833 = vmatpush1.bf16.msra.mxu0 %v3218_v24  ;;  %1915 = vmatpush1.bf16.msra.mxu1 %v3221_v25  ;;  %v3281_v24 = vld [vmem:[#allocation7 + $0x280] ss:$24 sps:$4 sm:$0xff]   ;;  %v3286_v25 = vld [vmem:[#allocation7 + $0x2b4] ss:$24 sps:$4 sm:$0xff]  }
 0x19a   :  { %1834 = vmatprep.subr.bf16.mxu0 %v3226_v27  ;;  %1916 = vmatprep.subr.bf16.mxu1 %v3229_v28  ;;  %v3284_v27 = vld [vmem:[#allocation7 + $0x2b0] ss:$24 sps:$4 sm:$0xff]   ;;  %v3289_v28 = vld [vmem:[#allocation7 + $0x2e4] ss:$24 sps:$4 sm:$0xff]  }
 0x19d   :  { %1835 = vmatpush1.bf16.msra.mxu0 %v3224_v30  ;;  %1917 = vmatpush1.bf16.msra.mxu1 %v3227_v31  ;;  %v3292_v30 = vld [vmem:[#allocation7 + $0x314] ss:$24 sps:$4 sm:$0xff]   ;;  %v3290_v31 = vld [vmem:[#allocation7 + $0x310] ss:$24 sps:$4 sm:$0xff]  }
 0x19e   :  { %1836 = vmatprep.subr.bf16.mxu0 %v3232_v32  ;;  %1918 = vmatprep.subr.bf16.mxu1 %v3235_v33  ;;  %v3295_v32 = vld [vmem:[#allocation7 + $0x344] ss:$24 sps:$4 sm:$0xff]   ;;  %v3293_v33 = vld [vmem:[#allocation7 + $0x340] ss:$24 sps:$4 sm:$0xff]  }
 0x1a1   :  { %1837 = vmatpush1.bf16.msra.mxu0 %v3230_v35  ;;  %1919 = vmatpush1.bf16.msra.mxu1 %v3233_v36  ;;  %v3296_v35 = vld [vmem:[#allocation7 + $0x370] ss:$24 sps:$4 sm:$0xff]   ;;  %v3301_v36 = vld [vmem:[#allocation7 + $0x3a4] ss:$24 sps:$4 sm:$0xff]  }
 0x1a2   :  { %1838 = vmatprep.subr.bf16.mxu0 %v3238_v38  ;;  %1920 = vmatprep.subr.bf16.mxu1 %v3241_v39  ;;  %v3299_v38 = vld [vmem:[#allocation7 + $0x3a0] ss:$24 sps:$4 sm:$0xff]   ;;  %v3304_v39 = vld [vmem:[#allocation7 + $0x3d4] ss:$24 sps:$4 sm:$0xff]  }
 0x1a5   :  { %1839 = vmatpush1.bf16.msra.mxu0 %v3236_v11  ;;  %1921 = vmatpush1.bf16.msra.mxu1 %v3239_v41  ;;  %v3307_v11 = vld [vmem:[#allocation7 + $0x404] ss:$24 sps:$4 sm:$0xff]   ;;  %v3350_v41 = vld [vmem:[#allocation8 + $0x70] sm:$0xff]  }
 0x1a6   :  { %1931 = vmatprep.subr.bf16.mxu0 %v3244_v42  ;;  %2859 = vmatprep.subr.bf16.mxu1 %v3338_v46  ;;  %v3351_v42 = vld [vmem:[#allocation8 + $0x30] sm:$0xff]   ;;  %v3313_v46 = vld [vmem:[#allocation7 + $0x464] ss:$24 sps:$4 sm:$0xff]  }
 0x1a8   :  { %1841 = vmatmul.mubr.bf16.vlgmr.msra.gmra.mrb[4].mxu0 %v3641_v43  ;;  %1923 = vmatmul.mubr.bf16.vlgmr.msra.gmra.mrb[4].mxu1 %v3641_v43 }
 0x1a9   :  { %1932 = vmatpush1.bf16.msra.mxu0 %v3242_v44  ;;  %1963 = vmatprep.mubr.bf16.mxu0 %v3618_v23  ;;  %v3256_v23 = vld [vmem:[#allocation7 + $0xd4] ss:$24 sps:$4 sm:$0xff]   ;;  %v3308_v44 = vld [vmem:[#allocation7 + $0x430] ss:$24 sps:$4 sm:$0xff]  }
 0x1aa   :  { %1933 = vmatprep.subr.bf16.mxu0 %v3247_v45  ;;  %2860 = vmatpush3.bf16.msra.mxu1 %v3339_v47  ;;  %v3352_v45 = vld [vmem:[#allocation8 + $0x78] sm:$0xff]  }
 0x1ab   :  { %2861 = vmatprep.subr.bf16.mxu1 %v3340_v48  ;;  %v3353_v47 = vld [vmem:[#allocation8 + $0x38] sm:$0xff]  }
 0x1ac   :  { %v3311_v48 = vld [vmem:[#allocation7 + $0x460] ss:$24 sps:$4 sm:$0xff]  }
 0x1ad   :  { %1934 = vmatpush1.bf16.msra.mxu0 %v3245_v49  ;;  %v3354_v49 = vld [vmem:[#allocation8 + $0xc0] sm:$0xff]  }
 0x1ae   :  { %1935 = vmatprep.subr.bf16.mxu0 %v3250_v50  ;;  %2862 = vmatpush3.bf16.msra.mxu1 %v3341_v51  ;;  %v3316_v50 = vld [vmem:[#allocation7 + $0x494] ss:$24 sps:$4 sm:$0xff]   ;;  %v3314_v51 = vld [vmem:[#allocation7 + $0x490] ss:$24 sps:$4 sm:$0xff]  }
 0x1af   :  { %2863 = vmatprep.subr.bf16.mxu1 %v3342_v52  ;;  %v3319_v52 = vld [vmem:[#allocation7 + $0x4c4] ss:$24 sps:$4 sm:$0xff]  }
 0x1b1   :  { %1936 = vmatpush1.bf16.msra.mxu0 %v3248_v53  ;;  %v3317_v53 = vld [vmem:[#allocation7 + $0x4c0] ss:$24 sps:$4 sm:$0xff]  }
 0x1b2   :  { %1937 = vmatprep.subr.bf16.mxu0 %v3253_v54  ;;  %2864 = vmatpush3.bf16.msra.mxu1 %v3343_v55  ;;  %v3322_v54 = vld [vmem:[#allocation7 + $0x4f4] ss:$24 sps:$4 sm:$0xff]   ;;  %v3320_v55 = vld [vmem:[#allocation7 + $0x4f0] ss:$24 sps:$4 sm:$0xff]  }
 0x1b3   :  { %2865 = vmatprep.subr.bf16.mxu1 %v3344_v56  ;;  %v3325_v56 = vld [vmem:[#allocation7 + $0x524] ss:$24 sps:$4 sm:$0xff]  }
 0x1b5   :  { %1938 = vmatpush1.bf16.msra.mxu0 %v3251_v58  ;;  %v3323_v58 = vld [vmem:[#allocation7 + $0x520] ss:$24 sps:$4 sm:$0xff]  }
 0x1b6   :  { %1939 = vmatprep.subr.bf16.mxu0 %v3256_v23  ;;  %2866 = vmatpush3.bf16.msra.mxu1 %v3345_v59  ;;  %v3328_v23 = vld [vmem:[#allocation7 + $0x554] ss:$24 sps:$4 sm:$0xff]   ;;  %v3326_v59 = vld [vmem:[#allocation7 + $0x550] ss:$24 sps:$4 sm:$0xff]  }
 0x1b7   :  { %2867 = vmatprep.subr.bf16.mxu1 %v3346_v60  ;;  %v3331_v60 = vld [vmem:[#allocation7 + $0x584] ss:$24 sps:$4 sm:$0xff]  }
 0x1b9   :  { %1940 = vmatpush1.bf16.msra.mxu0 %v3254_v61  ;;  %v3329_v61 = vld [vmem:[#allocation7 + $0x580] ss:$24 sps:$4 sm:$0xff]  }
 0x1ba   :  { %1941 = vmatprep.subr.bf16.mxu0 %v3259_v62  ;;  %2868 = vmatpush3.bf16.msra.mxu1 %v3347_v63  ;;  %v3334_v62 = vld [vmem:[#allocation7 + $0x5b4] ss:$24 sps:$4 sm:$0xff]   ;;  %v3332_v63 = vld [vmem:[#allocation7 + $0x5b0] ss:$24 sps:$4 sm:$0xff]  }
 0x1bb   :  { %2869 = vmatprep.subr.bf16.mxu1 %v3348_v0  ;;  %v3337_v0 = vld [vmem:[#allocation7 + $0x5e4] ss:$24 sps:$4 sm:$0xff]  }
 0x1bd   :  { %1942 = vmatpush1.bf16.msra.mxu0 %v3257_v1  ;;  %v3335_v1 = vld [vmem:[#allocation7 + $0x5e0] ss:$24 sps:$4 sm:$0xff]  }
 0x1be   :  { %1943 = vmatprep.subr.bf16.mxu0 %v3262_v2  ;;  %2870 = vmatpush3.bf16.msra.mxu1 %v3349_v3  ;;  %v3652_v2 = vld [vmem:[%s3689_s4] sm:$0x3f] }
 0x1bf   :  { %2871 = vmatprep.subr.bf16.mxu1 %v3350_v41  ;;  %v780_v3 = vrot.slane %v3652_v2, %v155_v10  ;;  %v3369_v41 = vld [vmem:[#allocation8 + $0xb8] sm:$0xff]  }
 0x1c1   :  { %1944 = vmatpush1.bf16.msra.mxu0 %v3260_v4  ;;  %v784_v4 = vrot.slane %v3652_v2, %v159_v12  ;;  %v3355_v12 = vld [vmem:[#allocation8 + $0x80] sm:$0xff]  }
 0x1c2   :  { %1945 = vmatprep.subr.bf16.mxu0 %v3265_v5  ;;  %2872 = vmatpush3.bf16.msra.mxu1 %v3351_v42  ;;  %v792_v5 = vrot.slane %v3652_v2, %v167_v37  ;;  %v3357_v37 = vld [vmem:[#allocation8 + $0x88] sm:$0xff]   ;;  %v3370_v42 = vld [vmem:[#allocation8 + $0x140] sm:$0xff]  }
 0x1c3   :  { %2873 = vmatprep.subr.bf16.mxu1 %v3352_v45 }
 0x1c5   :  { %1946 = vmatpush1.bf16.msra.mxu0 %v3263_v6 }
 0x1c6   :  { %1947 = vmatprep.subr.bf16.mxu0 %v3268_v7  ;;  %2874 = vmatpush3.bf16.msra.mxu1 %v3353_v47  ;;  %v3374_v47 = vld [vmem:[#allocation8 + $0x150] sm:$0xff]  }
 0x1c7   :  { %2881 = vmatprep.subr.bf16.mxu1 %v3354_v49  ;;  %v3376_v49 = vld [vmem:[#allocation8 + $0x158] sm:$0xff]  }
 0x1c9   :  { %1948 = vmatpush1.bf16.msra.mxu0 %v3266_v8 }
 0x1ca   :  { %1949 = vmatprep.subr.bf16.mxu0 %v3271_v13 }
 0x1cd   :  { %1950 = vmatpush1.bf16.msra.mxu0 %v3269_v14 }
 0x1ce   :  { %1951 = vmatprep.subr.bf16.mxu0 %v3274_v15 }
 0x1d1   :  { %1952 = vmatpush1.bf16.msra.mxu0 %v3272_v16 }
 0x1d2   :  { %1953 = vmatprep.subr.bf16.mxu0 %v3277_v17 }
 0x1d5   :  { %1954 = vmatpush1.bf16.msra.mxu0 %v3275_v18 }
 0x1d6   :  { %1955 = vmatprep.subr.bf16.mxu0 %v3280_v19 }
 0x1d9   :  { %1956 = vmatpush1.bf16.msra.mxu0 %v3278_v20 }
 0x1da   :  { %1957 = vmatprep.subr.bf16.mxu0 %v3283_v21 }
 0x1dd   :  { %1958 = vmatpush1.bf16.msra.mxu0 %v3281_v24 }
 0x1de   :  { %1959 = vmatprep.subr.bf16.mxu0 %v3286_v25 }
 0x1e1   :  { %1960 = vmatpush1.bf16.msra.mxu0 %v3284_v27  ;;  %v3356_v27 = vld [vmem:[#allocation8 + $0xc8] sm:$0xff]  }
 0x1e2   :  { %1961 = vmatprep.subr.bf16.mxu0 %v3289_v28 }
 0x1e5   :  { %1962 = vmatpush1.bf16.msra.mxu0 %v3287_v29  ;;  %v3358_v29 = vld [vmem:[#allocation8 + $0xd0] sm:$0xff]  }
 0x1e6   :  { %1972 = vmatprep.subr.bf16.mxu0 %v3292_v30  ;;  %v3359_v30 = vld [vmem:[#allocation8 + $0x90] sm:$0xff]  }
 0x1e8   :  { %1964 = vmatmul.mubr.bf16.vlgmr.msra.gmra.mrb[8].mxu0 %v3620_v26  ;;  %v3305_v26 = vld [vmem:[#allocation7 + $0x400] ss:$24 sps:$4 sm:$0xff]  }
 0x1e9   :  { %1973 = vmatpush1.bf16.msra.mxu0 %v3290_v31  ;;  %2004 = vmatprep.mubr.bf16.mxu0 %v3632_v57  ;;  %v3310_v57 = vld [vmem:[#allocation7 + $0x434] ss:$24 sps:$4 sm:$0xff]   ;;  %v3360_v31 = vld [vmem:[#allocation8 + $0xd8] sm:$0xff]  }
 0x1ea   :  { %1974 = vmatprep.subr.bf16.mxu0 %v3295_v32  ;;  %v3361_v32 = vld [vmem:[#allocation8 + $0x98] sm:$0xff]  }
 0x1ed   :  { %1975 = vmatpush1.bf16.msra.mxu0 %v3293_v33  ;;  %v3362_v33 = vld [vmem:[#allocation8 + $0xe0] sm:$0xff]  }
 0x1ee   :  { %1976 = vmatprep.subr.bf16.mxu0 %v3298_v34  ;;  %v3363_v34 = vld [vmem:[#allocation8 + $0xa0] sm:$0xff]  }
 0x1f1   :  { %1977 = vmatpush1.bf16.msra.mxu0 %v3296_v35  ;;  %v3364_v35 = vld [vmem:[#allocation8 + $0xe8] sm:$0xff]  }
 0x1f2   :  { %1978 = vmatprep.subr.bf16.mxu0 %v3301_v36  ;;  %v3365_v36 = vld [vmem:[#allocation8 + $0xa8] sm:$0xff]  }
 0x1f5   :  { %1979 = vmatpush1.bf16.msra.mxu0 %v3299_v38  ;;  %v788_v38 = vrot.slane %v3652_v2, %v163_v22  ;;  %v3373_v22 = vld [vmem:[#allocation8 + $0x108] sm:$0xff]  }
 0x1f6   :  { %1980 = vmatprep.subr.bf16.mxu0 %v3304_v39  ;;  %v3366_v39 = vld [vmem:[#allocation8 + $0xf0] sm:$0xff]  }
 0x1f9   :  { %1981 = vmatpush1.bf16.msra.mxu0 %v3302_v40  ;;  %v3367_v40 = vld [vmem:[#allocation8 + $0xb0] sm:$0xff]  }
 0x1fa   :  { %1982 = vmatprep.subr.bf16.mxu0 %v3307_v11 }
 0x1fd   :  { %1983 = vmatpush1.bf16.msra.mxu0 %v3305_v26  ;;  %v3368_v26 = vld [vmem:[#allocation8 + $0xf8] sm:$0xff]  }
 0x1fe   :  { %1984 = vmatprep.subr.bf16.mxu0 %v3310_v57 }
 0x201   :  { %1985 = vmatpush1.bf16.msra.mxu0 %v3308_v44  ;;  %v3371_v44 = vld [vmem:[#allocation8 + $0x100] sm:$0xff]  }
 0x202   :  { %1986 = vmatprep.subr.bf16.mxu0 %v3313_v46  ;;  %v3372_v46 = vld [vmem:[#allocation8 + $0x148] sm:$0xff]  }
 0x205   :  { %1987 = vmatpush1.bf16.msra.mxu0 %v3311_v48  ;;  %v3375_v48 = vld [vmem:[#allocation8 + $0x110] sm:$0xff]  }
 0x206   :  { %1988 = vmatprep.subr.bf16.mxu0 %v3316_v50  ;;  %v3377_v50 = vld [vmem:[#allocation8 + $0x118] sm:$0xff]  }
 0x209   :  { %1989 = vmatpush1.bf16.msra.mxu0 %v3314_v51  ;;  %v3378_v51 = vld [vmem:[#allocation8 + $0x160] sm:$0xff]  }
 0x20a   :  { %1990 = vmatprep.subr.bf16.mxu0 %v3319_v52  ;;  %v3379_v52 = vld [vmem:[#allocation8 + $0x120] sm:$0xff]  }
 0x20d   :  { %1991 = vmatpush1.bf16.msra.mxu0 %v3317_v53  ;;  %v3380_v53 = vld [vmem:[#allocation8 + $0x168] sm:$0xff]  }
 0x20e   :  { %1992 = vmatprep.subr.bf16.mxu0 %v3322_v54  ;;  %v3381_v54 = vld [vmem:[#allocation8 + $0x128] sm:$0xff]  }
 0x211   :  { %1993 = vmatpush1.bf16.msra.mxu0 %v3320_v55  ;;  %v3382_v55 = vld [vmem:[#allocation8 + $0x170] sm:$0xff]  }
 0x212   :  { %1994 = vmatprep.subr.bf16.mxu0 %v3325_v56  ;;  %v3383_v56 = vld [vmem:[#allocation8 + $0x130] sm:$0xff]  }
 0x215   :  { %1995 = vmatpush1.bf16.msra.mxu0 %v3323_v58  ;;  %v3384_v58 = vld [vmem:[#allocation8 + $0x178] sm:$0xff]  }
 0x216   :  { %1996 = vmatprep.subr.bf16.mxu0 %v3328_v23  ;;  %v3385_v23 = vld [vmem:[#allocation8 + $0x138] sm:$0xff]  }
 0x219   :  { %1997 = vmatpush1.bf16.msra.mxu0 %v3326_v59  ;;  %v795_v59 = vsub.s32 4, %v3603_v9 }
 0x21a   :  { %1998 = vmatprep.subr.bf16.mxu0 %v3331_v60  ;;  %v799_v60 = vsub.s32 5, %v3603_v9 }
 0x21d   :  { %1999 = vmatpush1.bf16.msra.mxu0 %v3329_v61  ;;  %v796_v61 = vrot.slane %v3652_v2, %v795_v59 }
 0x21e   :  { %2000 = vmatprep.subr.bf16.mxu0 %v3334_v62  ;;  %v800_v62 = vrot.slane %v3652_v2, %v799_v60  ;;  %v2810_v2 = vld [vmem:[%s3691_s6] ss:$0 sm:$0xff] }
 0x221   :  { %2001 = vmatpush1.bf16.msra.mxu0 %v3332_v63 }
 0x222   :  { %2002 = vmatprep.subr.bf16.mxu0 %v3337_v0 }
 0x225   :  { %2003 = vmatpush1.bf16.msra.mxu0 %v3335_v1 }
 0x228   :  { %2005 = vmatmul.mubr.bf16.vlgmr.msra.gmra.mrb[8].mxu0 %v3641_v43 }
 0x27b   :  { %v1842_v6 = vpop.f32.mrb[4].mxu0  ;;  %v1924_v7 = vpop.f32.mrb[4].mxu1 }
 0x27c   :  { %v2925_v43 = vadd.f32 %v1842_v6, %v780_v3  ;;  %v1844_v8 = vpop.f32.mrb[5].mxu0  ;;  %v1926_v13 = vpop.f32.mrb[5].mxu1  ;;  %v2927_v11 = vadd.f32 %v1924_v7, %v788_v38 }
 0x27d   :  { %v2926_v14 = vadd.f32 %v1844_v8, %v784_v4  ;;  %v2928_v15 = vadd.f32 %v1926_v13, %v792_v5  ;;  %v1846_v16 = vpop.f32.mrb[6].mxu0  ;;  %v1928_v17 = vpop.f32.mrb[6].mxu1 }
 0x27e   :  { %v2013_v18 = vmax.f32 %v2925_v43, 0.0  ;;  %v1847_v19 = vpop.f32.mrb[7].mxu0  ;;  %v1929_v10 = vpop.f32.mrb[7].mxu1  ;;  %v2015_v57 = vmax.f32 %v2927_v11, 0.0 }
 0x27f   :  { %v2014_v20 = vmax.f32 %v2926_v14, 0.0  ;;  %v2016_v21 = vmax.f32 %v2928_v15, 0.0 }
 0x280   :  { %v2019_v25 = vpack.c.bf16 %v2013_v18, %v2013_v18  ;;  %v2021_v45 = vpack.c.bf16 %v2015_v57, %v2015_v57 }
 0x281   :  { %v2020_v24 = vpack.c.bf16 %v2014_v20, %v2014_v20  ;;  %v2022_v28 = vpack.c.bf16 %v2016_v21, %v2016_v21 }
 0x283   :  { %2448 = vmatprep.mubr.bf16.mxu1 %v2020_v24 }
 0x284   :  { %2449 = vmatmul.mubr.bf16.vlgmr.msra.gmra.mrb[8].mxu1 %v2019_v25 }
 0x285   :  { %2882 = vmatpush3.bf16.msra.mxu1 %v3355_v12  ;;  %2488 = vmatprep.mubr.bf16.mxu1 %v2022_v28 }
 0x286   :  { %2883 = vmatprep.subr.bf16.mxu1 %v3356_v27 }
 0x289   :  { %2884 = vmatpush3.bf16.msra.mxu1 %v3357_v37 }
 0x28a   :  { %2885 = vmatprep.subr.bf16.mxu1 %v3358_v29 }
 0x28d   :  { %2886 = vmatpush3.bf16.msra.mxu1 %v3359_v30 }
 0x28e   :  { %2887 = vmatprep.subr.bf16.mxu1 %v3360_v31 }
 0x291   :  { %2888 = vmatpush3.bf16.msra.mxu1 %v3361_v32 }
 0x292   :  { %2889 = vmatprep.subr.bf16.mxu1 %v3362_v33 }
 0x295   :  { %2890 = vmatpush3.bf16.msra.mxu1 %v3363_v34 }
 0x296   :  { %2891 = vmatprep.subr.bf16.mxu1 %v3364_v35 }
 0x299   :  { %2892 = vmatpush3.bf16.msra.mxu1 %v3365_v36 }
 0x29a   :  { %2893 = vmatprep.subr.bf16.mxu1 %v3366_v39 }
 0x29d   :  { %2894 = vmatpush3.bf16.msra.mxu1 %v3367_v40 }
 0x29e   :  { %2895 = vmatprep.subr.bf16.mxu1 %v3368_v26 }
 0x2a1   :  { %2896 = vmatpush3.bf16.msra.mxu1 %v3369_v41 }
 0x2a2   :  { %2903 = vmatprep.subr.bf16.mxu1 %v3370_v42 }
 0x2a4   :  { %2489 = vmatmul.mubr.bf16.vlgmr.msra.gmra.mrb[12].mxu1 %v2021_v45 }
 0x2a5   :  { %2904 = vmatpush3.bf16.msra.mxu1 %v3371_v44 }
 0x2a6   :  { %2905 = vmatprep.subr.bf16.mxu1 %v3372_v46 }
 0x2a9   :  { %2906 = vmatpush3.bf16.msra.mxu1 %v3373_v22 }
 0x2aa   :  { %2907 = vmatprep.subr.bf16.mxu1 %v3374_v47 }
 0x2ad   :  { %2908 = vmatpush3.bf16.msra.mxu1 %v3375_v48 }
 0x2ae   :  { %2909 = vmatprep.subr.bf16.mxu1 %v3376_v49 }
 0x2b1   :  { %2910 = vmatpush3.bf16.msra.mxu1 %v3377_v50 }
 0x2b2   :  { %2911 = vmatprep.subr.bf16.mxu1 %v3378_v51 }
 0x2b5   :  { %2912 = vmatpush3.bf16.msra.mxu1 %v3379_v52 }
 0x2b6   :  { %2913 = vmatprep.subr.bf16.mxu1 %v3380_v53 }
 0x2b9   :  { %2914 = vmatpush3.bf16.msra.mxu1 %v3381_v54 }
 0x2ba   :  { %2915 = vmatprep.subr.bf16.mxu1 %v3382_v55 }
 0x2bd   :  { %2916 = vmatpush3.bf16.msra.mxu1 %v3383_v56 }
 0x2be   :  { %2917 = vmatprep.subr.bf16.mxu1 %v3384_v58 }
 0x2c1   :  { %2918 = vmatpush3.bf16.msra.mxu1 %v3385_v23 }
 0x2fb   :  { %v2006_v63 = vpop.f32.mrb[8].mxu0 }
 0x2fc   :  { %v2929_v0 = vadd.f32 %v2006_v63, %v796_v61  ;;  %v2008_v1 = vpop.f32.mrb[9].mxu0 }
 0x2fd   :  { %v2930_v3 = vadd.f32 %v2008_v1, %v800_v62  ;;  %v2010_v4 = vpop.f32.mrb[10].mxu0 }
 0x2fe   :  { %v2017_v5 = vmax.f32 %v2929_v0, 0.0  ;;  %v2011_v6 = vpop.f32.mrb[11].mxu0 }
 0x2ff   :  { %v2018_v7 = vmax.f32 %v2930_v3, 0.0 }
 0x300   :  { %v2023_v8 = vpack.c.bf16 %v2017_v5, %v2017_v5 }
 0x301   :  { %v2024_v43 = vpack.c.bf16 %v2018_v7, %v2018_v7 }
 0x303   :  { %2528 = vmatprep.mubr.bf16.mxu1 %v2024_v43 }
 0x304   :  { %2529 = vmatmul.mubr.bf16.vlgmr.msra.gmra.mrb[16].mxu1 %v2023_v8 }
 0x357   :  { %v2875_v13 = vpop.f32.mrb[8].mxu1 }
 0x358   :  { %v2876_v14 = vpop.f32.mrb[9].mxu1 }
 0x359   :  { %v2877_v15 = vadd.f32 %v2876_v14, %v2875_v13  ;;  %v2878_v9 = vpop.f32.mrb[10].mxu1 }
 0x35a   :  { %v2879_v16 = vpop.f32.mrb[11].mxu1 }
 0x35b   :  { %v2451_v19 = vadd.f32 %v2877_v15, %v2810_v2 }
 0x377   :  { %v2897_v17 = vpop.f32.mrb[12].mxu1 }
 0x378   :  { %v2898_v18 = vpop.f32.mrb[13].mxu1 }
 0x379   :  { %v2899_v10 = vadd.f32 %v2898_v18, %v2897_v17  ;;  %v2900_v20 = vpop.f32.mrb[14].mxu1 }
 0x37a   :  { %v2901_v21 = vpop.f32.mrb[15].mxu1 }
 0x37b   :  { %v2491_v24 = vadd.f32 %v2899_v10, %v2451_v19 }
 0x3d7   :  { %v2919_v12 = vpop.f32.mrb[16].mxu1 }
 0x3d8   :  { %v2920_v25 = vpop.f32.mrb[17].mxu1 }
 0x3d9   :  { %v2921_v27 = vadd.f32 %v2920_v25, %v2919_v12  ;;  %v2922_v28 = vpop.f32.mrb[18].mxu1 }
 0x3da   :  { %v2923_v37 = vpop.f32.mrb[19].mxu1 }
 0x3db   :  { %v2531_v29 = vadd.f32 %v2921_v27, %v2491_v24 }
 0x3dd   :  { %2536 = vst [vmem:[#allocation10] sm:$0xff] %v2531_v29 }
 0x3de   :  { %3485 = shalt.err (!%p3482_p8)
}
 0x3df   :  { %s3486_s12 = scalar_lea.hbm %s3692_s7, 128 }
 0x3e0   :  { %p3487_p9 = scmp.ne.s32.totalorder %s3692_s7, %s3486_s12  ;;  %p3490_p10 = scmp.lt.u32.totalorder %s3486_s12, %s3692_s7 }
 0x3e2   :  { %p3492_p11 = pnand %p3490_p10, %p3487_p9 }
 0x3e4   :  { %3495 = shalt.err (!%p3492_p11)
}
 0x3e5   :  { %2546 = dma.vmem_to_hbm [thread:$0]  %s2544_s9, 128, %s3692_s7, [#allocation4]  }
 0x3e6   :  { %3502 = dma.done.wait [#allocation4], 128  }
 0x3e7   :  { %3503 = vsyncadd [#allocation4], 4294967168 }
 0x3e8   :  { %2550 = vsyncpa [#allocation3], 1 }
 0x3e9   :  { %2551 = vsyncpa [#allocation6], 1 }
 0x3ea   :  { %2552 = vsyncpa [#allocation9], 1 }
 0x3eb   :  { %2553 = vsyncpa [#allocation4], 1 }

</bundles_post_ra>
